<compile_context>
chip_gen: v7x
topology: tpu7x:2x2x1
jax: 0.10.0
libtpu: 0.0.40
codegen_flags: <defaults>
</compile_context>

<pallas_src>
import functools

import jax
import jax.numpy as jnp
from jax import lax
from jax.experimental import pallas as pl
from jax.experimental.pallas import tpu as pltpu

_LANE = 128


# ----------------------------- Pallas kernel ------------------------------- #
def _conv_bn_relu_kernel(x_ref, w_ref, shift_ref, o_ref, *, kh, kw, stride, t_h, wo):
    """Direct convolution for one (batch image, output-row tile).

    x_ref:     (1, Hp, Wp, Cin) bf16  padded NHWC image, resident per batch index
    w_ref:     (kh*kw, Cin, Cp) bf16  conv weight with BN scale folded in, resident
    shift_ref: (1, Cp)          f32   beta - mean*scale (zeros in padded lanes), resident
    o_ref:     (1, t_h, Wo, Cp) bf16  output tile
    """
    cin = x_ref.shape[3]
    cp = o_ref.shape[3]
    row0 = pl.program_id(1) * (t_h * stride)     # first input row of this output tile

    acc = jnp.zeros((t_h * wo, cp), jnp.float32)
    # kh*kw is small and static: unrolled Python loop -> static W offsets, one MXU
    # matmul per kernel tap, all accumulating in f32 (whole reduction inside one step).
    for i in range(kh):
        for j in range(kw):
            if stride == 1:
                slab = x_ref[0, pl.ds(row0 + i, t_h), pl.ds(j, wo), :]
            else:
                # TODO(synk): strided sublane slice is the less-exercised lowering path.
                slab = x_ref[0, pl.ds(row0 + i, t_h, stride), pl.ds(j, wo, stride), :]
            acc = acc + jnp.dot(slab.reshape(t_h * wo, cin), w_ref[i * kw + j],
                                preferred_element_type=jnp.float32)

    y = jnp.maximum(acc + shift_ref[...], 0.0)              # BN shift + ReLU in f32
    o_ref[0] = y.reshape(t_h, wo, cp).astype(o_ref.dtype)   # bf16 writeback


# ------------------------------ planning helpers ---------------------------- #
def _round_up(x, m):
    return ((x + m - 1) // m) * m


def _vmem_capacity_bytes():
    try:
        return int(pltpu.get_tpu_info().vmem_capacity_bytes)
    except Exception:
        return 64 * 1024 * 1024        # conservative default (v7x per-TC physical VMEM)


def _num_tensorcores():
    """Best-effort TensorCore-per-device count (megacore detection); defaults to 1."""
    try:
        dev = jax.devices()[0]
    except Exception:
        return 1
    for attr in ("num_cores", "core_count", "num_cores_per_chip"):
        val = getattr(dev, attr, None)
        if isinstance(val, int) and val > 0:
            return val
    return 1


def _plan_tiles(N, H, W, Cin, Cout, kh, kw, stride, padding, Ho, Wo, Cp):
    """Pick the output-row tile t_h from the VMEM budget and core count."""
    cap = _vmem_capacity_bytes()
    budget = max(cap // 2, 16 * 1024 * 1024)     # leave headroom for compiler scratch

    def footprint(t_h):
        ho_pad = _round_up(Ho, t_h)
        hp = max(H + 2 * padding, (ho_pad - 1) * stride + kh)
        wp = max(W + 2 * padding, (Wo - 1) * stride + kw)
        b = 2 * hp * wp * Cin * 2                # resident image block (double-buffered)
        b += 2 * kh * kw * Cin * Cp * 2          # resident weights (Pallas allocs 2 bufs)
        b += 2 * Cp * 4                          # shift
        b += 2 * t_h * Wo * Cp * 2               # bf16 output tile, double-buffered
        b += t_h * Wo * Cp * 4                   # f32 accumulator
        b += 2 * t_h * Wo * Cin * 2              # slab temporaries (rough)
        return b

    t_h = min(Ho, max(8, 8192 // max(Wo, 1)))    # cap accumulator at ~8K rows
    while t_h > 1 and footprint(t_h) > budget:
        t_h = (t_h + 1) // 2

    # Only force extra grid steps when there is >1 TensorCore to shard them across
    # (single-TC v5e/v6e keep the largest tile; extra steps are pure overhead there).
    cores = _num_tensorcores()
    while (cores >= 2 and N * pl.cdiv(Ho, t_h) < cores and t_h > 1
           and pl.cdiv(Ho, (t_h + 1) // 2) > pl.cdiv(Ho, t_h)):
        t_h = (t_h + 1) // 2

    vmem_limit = int(min(0.9 * cap, max(2 * footprint(t_h) + (8 << 20), 32 << 20)))
    return t_h, vmem_limit


# ------------------------------ Module wrapper ------------------------------ #
@functools.partial(jax.jit, static_argnames=("kernel_size", "padding", "stride"))
def conv_module_forward(x_nchw, weight, gamma, beta, run_mean, run_var,
                        *, kernel_size, padding, stride, eps=1e-5):
    """Forward of ConvModule (Conv2d bias=False -> BatchNorm2d eval -> ReLU).

    x_nchw: (N, Cin, H, W).  weight: (Cout, Cin, kh, kw).  Returns (N, Cout, Ho, Wo) f32.
    """
    del kernel_size                                     # kh/kw come from the weight shape
    N, Cin, H, W = x_nchw.shape
    Cout, _, kh, kw = weight.shape
    Ho = (H + 2 * padding - kh) // stride + 1
    Wo = (W + 2 * padding - kw) // stride + 1

    compute_dtype = jnp.bfloat16
    Cp = _round_up(Cout, _LANE)   # lane-dense output; 256-wide only pays for Cout >= 256
    t_h, vmem_limit = _plan_tiles(N, H, W, Cin, Cout, kh, kw, stride, padding, Ho, Wo, Cp)
    Ho_pad = _round_up(Ho, t_h)

    # Rows/cols of the padded input actually addressed by the kernel (incl. Ho-pad rows).
    Hp = max(H + 2 * padding, (Ho_pad - 1) * stride + kh)
    Wp = max(W + 2 * padding, (Wo - 1) * stride + kw)

    # --- glue: NCHW -> NHWC with fused bf16 cast, single zero-pad (read HBM once) ---
    x = jnp.transpose(x_nchw, (0, 2, 3, 1)).astype(compute_dtype)           # (N, H, W, Cin)
    x = jnp.pad(x, ((0, 0),
                    (padding, Hp - H - padding),
                    (padding, Wp - W - padding),
                    (0, 0)))                                                # (N, Hp, Wp, Cin)

    # --- fold BN (inference) into weights / shift; pad Cout to 128 lanes ---
    scale = gamma / jnp.sqrt(run_var + eps)                                 # (Cout,)
    shift = beta - run_mean * scale                                         # (Cout,)
    w = jnp.transpose(weight, (2, 3, 1, 0)).reshape(kh * kw, Cin, Cout)     # tap-major
    w = (w * scale[None, None, :]).astype(compute_dtype)
    w = jnp.pad(w, ((0, 0), (0, 0), (0, Cp - Cout)))                        # (kh*kw, Cin, Cp)
    shift_p = jnp.pad(shift.astype(jnp.float32).reshape(1, Cout),
                      ((0, 0), (0, Cp - Cout)))                             # (1, Cp)

    cost = pl.CostEstimate(
        flops=2 * N * Ho * Wo * kh * kw * Cin * Cout,
        transcendentals=0,
        bytes_accessed=(x.size * 2 + w.size * 2 + shift_p.size * 4
                        + N * Ho * Wo * Cout * 2),
    )

    grid = (N, Ho_pad // t_h)
    out = pl.pallas_call(
        functools.partial(_conv_bn_relu_kernel,
                          kh=kh, kw=kw, stride=stride, t_h=t_h, wo=Wo),
        out_shape=jax.ShapeDtypeStruct((N, Ho_pad, Wo, Cp), compute_dtype),
        grid_spec=pltpu.PrefetchScalarGridSpec(
            num_scalar_prefetch=0,
            grid=grid,
            in_specs=[
                # whole padded image, resident across the h axis (DMA'd once per n)
                pl.BlockSpec((1, Hp, Wp, Cin), lambda n, h: (n, 0, 0, 0)),
                # resident weights / shift (constant block index -> single DMA)
                pl.BlockSpec((kh * kw, Cin, Cp), lambda n, h: (0, 0, 0)),
                pl.BlockSpec((1, Cp), lambda n, h: (0, 0)),
            ],
            out_specs=pl.BlockSpec((1, t_h, Wo, Cp), lambda n, h: (n, h, 0, 0)),
        ),
        compiler_params=pltpu.CompilerParams(
            dimension_semantics=("parallel", "parallel"),
            vmem_limit_bytes=vmem_limit),
        cost_estimate=cost,
    )(x, w, shift_p)

    # NOTE: if the downstream consumer works in NHWC / bf16, return out[:, :Ho, :, :Cout]
    # directly and drop the transpose + f32 cast (saves one strided HBM pass).
    out = out[:, :Ho, :, :Cout]                                             # bf16 NHWC
    return jnp.transpose(out, (0, 3, 1, 2)).astype(jnp.float32)             # NCHW f32


# --------------------------- reference (pure JAX) --------------------------- #
def conv_module_reference(x_nchw, weight, gamma, beta, run_mean, run_var,
                          *, padding, stride, eps=1e-5):
    y = lax.conv_general_dilated(
        x_nchw, weight,
        window_strides=(stride, stride),
        padding=((padding, padding), (padding, padding)),
        dimension_numbers=("NCHW", "OIHW", "NCHW"),
    )
    scale = gamma / jnp.sqrt(run_var + eps)
    shift = beta - run_mean * scale
    y = y * scale[None, :, None, None] + shift[None, :, None, None]
    return jnp.maximum(y, 0.0)


# ----------------------------------- main ----------------------------------- #
if __name__ == "__main__":
    key = jax.random.PRNGKey(0)
    k_x, k_w, k_g, k_b, k_m, k_v = jax.random.split(key, 6)

    # Small shapes consistent with ConvModule(in_channel=4, out_channel=8, kernel_size=3, padding=1)
    N, Cin, H, W = 2, 4, 16, 16
    Cout, ksz, pad, stride = 8, 3, 1, 1

    x = jax.random.normal(k_x, (N, Cin, H, W), dtype=jnp.float32)
    weight = jax.random.normal(k_w, (Cout, Cin, ksz, ksz), dtype=jnp.float32) * 0.1
    gamma = 1.0 + 0.1 * jax.random.normal(k_g, (Cout,), dtype=jnp.float32)
    beta = 0.1 * jax.random.normal(k_b, (Cout,), dtype=jnp.float32)
    run_mean = 0.1 * jax.random.normal(k_m, (Cout,), dtype=jnp.float32)
    run_var = jnp.abs(jax.random.normal(k_v, (Cout,), dtype=jnp.float32)) + 0.5

    out = conv_module_forward(x, weight, gamma, beta, run_mean, run_var,
                              kernel_size=ksz, padding=pad, stride=stride)
    out = jax.block_until_ready(out)

    ref = conv_module_reference(x, weight, gamma, beta, run_mean, run_var,
                                padding=pad, stride=stride)
    assert out.shape == (N, Cout, H, W), out.shape
    # bf16 activations/weights (f32 accumulation) + bf16 output store: tolerance
    # loosened to ~1e-2-level numerics; real indexing bugs would be O(0.5+).
    max_err = float(jnp.max(jnp.abs(out - ref)))
    assert jnp.allclose(out, ref, atol=7.5e-2, rtol=7.5e-2), max_err

    print("KERNEL_OK")
</pallas_src>

<mosaic_0001>
module attributes {stable_mosaic.version = 11 : i64} {
  func.func @_conv_bn_relu_kernel(%arg0: i32, %arg1: i32, %arg2: memref<1x18x18x4xbf16, #tpu.memory_space<vmem>>, %arg3: memref<9x4x128xbf16, #tpu.memory_space<vmem>>, %arg4: memref<1x128xf32, #tpu.memory_space<vmem>>, %arg5: memref<1x16x16x128xbf16, #tpu.memory_space<vmem>>) attributes {dimension_semantics = [#tpu.dimension_semantics<parallel>, #tpu.dimension_semantics<parallel>], iteration_bounds = array<i64: 2, 1>, scalar_prefetch = 0 : i64, scratch_operands = 0 : i64, tpu.core_type = #tpu.core_type<tc>, window_params = [{transform_indices = @transform_0, window_bounds = array<i64: 1, 18, 18, 4>}, {pipeline_mode = #tpu.pipeline_mode<synchronous>, transform_indices = @transform_1, window_bounds = array<i64: 9, 4, 128>}, {pipeline_mode = #tpu.pipeline_mode<synchronous>, transform_indices = @transform_2, window_bounds = array<i64: 1, 128>}, {transform_indices = @transform_3, window_bounds = array<i64: 1, 16, 16, 128>}]} {
    %c16_i32 = arith.constant 16 : i32
    %0 = arith.muli %arg1, %c16_i32 : i32
    %cst = arith.constant 0.000000e+00 : f32
    %1 = vector.broadcast %cst : f32 to vector<256x128xf32>
    %c0_i32 = arith.constant 0 : i32
    %2 = arith.addi %0, %c0_i32 : i32
    %c0 = arith.constant 0 : index
    %3 = arith.index_cast %2 : i32 to index
    %c0_0 = arith.constant 0 : index
    %c0_1 = arith.constant 0 : index
    %4 = vector.load %arg2[%c0, %3, %c0_0, %c0_1] : memref<1x18x18x4xbf16, #tpu.memory_space<vmem>>, vector<1x16x16x4xbf16>
    %5 = vector.shape_cast %4 : vector<1x16x16x4xbf16> to vector<16x16x4xbf16>
    %6 = vector.shape_cast %5 : vector<16x16x4xbf16> to vector<256x4xbf16>
    %c0_2 = arith.constant 0 : index
    %c0_3 = arith.constant 0 : index
    %c0_4 = arith.constant 0 : index
    %7 = vector.load %arg3[%c0_2, %c0_3, %c0_4] : memref<9x4x128xbf16, #tpu.memory_space<vmem>>, vector<1x4x128xbf16>
    %8 = vector.shape_cast %7 : vector<1x4x128xbf16> to vector<4x128xbf16>
    %cst_5 = arith.constant dense<0.000000e+00> : vector<256x128xf32>
    %9 = tpu.matmul %6, %8, %cst_5 {dimension_numbers = #tpu.dot_dimension_numbers<[1], [0], [0], [1], [0, 0, 1, 1], [], []>} : vector<256x4xbf16>, vector<4x128xbf16>, vector<256x128xf32> -> vector<256x128xf32>
    %10 = arith.addf %1, %9 : vector<256x128xf32>
    %c0_i32_6 = arith.constant 0 : i32
    %11 = arith.addi %0, %c0_i32_6 : i32
    %c0_7 = arith.constant 0 : index
    %12 = arith.index_cast %11 : i32 to index
    %c1 = arith.constant 1 : index
    %c0_8 = arith.constant 0 : index
    %13 = vector.load %arg2[%c0_7, %12, %c1, %c0_8] : memref<1x18x18x4xbf16, #tpu.memory_space<vmem>>, vector<1x16x16x4xbf16>
    %14 = vector.shape_cast %13 : vector<1x16x16x4xbf16> to vector<16x16x4xbf16>
    %15 = vector.shape_cast %14 : vector<16x16x4xbf16> to vector<256x4xbf16>
    %c1_9 = arith.constant 1 : index
    %c0_10 = arith.constant 0 : index
    %c0_11 = arith.constant 0 : index
    %16 = vector.load %arg3[%c1_9, %c0_10, %c0_11] : memref<9x4x128xbf16, #tpu.memory_space<vmem>>, vector<1x4x128xbf16>
    %17 = vector.shape_cast %16 : vector<1x4x128xbf16> to vector<4x128xbf16>
    %cst_12 = arith.constant dense<0.000000e+00> : vector<256x128xf32>
    %18 = tpu.matmul %15, %17, %cst_12 {dimension_numbers = #tpu.dot_dimension_numbers<[1], [0], [0], [1], [0, 0, 1, 1], [], []>} : vector<256x4xbf16>, vector<4x128xbf16>, vector<256x128xf32> -> vector<256x128xf32>
    %19 = arith.addf %10, %18 : vector<256x128xf32>
    %c0_i32_13 = arith.constant 0 : i32
    %20 = arith.addi %0, %c0_i32_13 : i32
    %c0_14 = arith.constant 0 : index
    %21 = arith.index_cast %20 : i32 to index
    %c2 = arith.constant 2 : index
    %c0_15 = arith.constant 0 : index
    %22 = vector.load %arg2[%c0_14, %21, %c2, %c0_15] : memref<1x18x18x4xbf16, #tpu.memory_space<vmem>>, vector<1x16x16x4xbf16>
    %23 = vector.shape_cast %22 : vector<1x16x16x4xbf16> to vector<16x16x4xbf16>
    %24 = vector.shape_cast %23 : vector<16x16x4xbf16> to vector<256x4xbf16>
    %c2_16 = arith.constant 2 : index
    %c0_17 = arith.constant 0 : index
    %c0_18 = arith.constant 0 : index
    %25 = vector.load %arg3[%c2_16, %c0_17, %c0_18] : memref<9x4x128xbf16, #tpu.memory_space<vmem>>, vector<1x4x128xbf16>
    %26 = vector.shape_cast %25 : vector<1x4x128xbf16> to vector<4x128xbf16>
    %cst_19 = arith.constant dense<0.000000e+00> : vector<256x128xf32>
    %27 = tpu.matmul %24, %26, %cst_19 {dimension_numbers = #tpu.dot_dimension_numbers<[1], [0], [0], [1], [0, 0, 1, 1], [], []>} : vector<256x4xbf16>, vector<4x128xbf16>, vector<256x128xf32> -> vector<256x128xf32>
    %28 = arith.addf %19, %27 : vector<256x128xf32>
    %c1_i32 = arith.constant 1 : i32
    %29 = arith.addi %0, %c1_i32 : i32
    %c0_20 = arith.constant 0 : index
    %30 = arith.index_cast %29 : i32 to index
    %c0_21 = arith.constant 0 : index
    %c0_22 = arith.constant 0 : index
    %31 = vector.load %arg2[%c0_20, %30, %c0_21, %c0_22] : memref<1x18x18x4xbf16, #tpu.memory_space<vmem>>, vector<1x16x16x4xbf16>
    %32 = vector.shape_cast %31 : vector<1x16x16x4xbf16> to vector<16x16x4xbf16>
    %33 = vector.shape_cast %32 : vector<16x16x4xbf16> to vector<256x4xbf16>
    %c3 = arith.constant 3 : index
    %c0_23 = arith.constant 0 : index
    %c0_24 = arith.constant 0 : index
    %34 = vector.load %arg3[%c3, %c0_23, %c0_24] : memref<9x4x128xbf16, #tpu.memory_space<vmem>>, vector<1x4x128xbf16>
    %35 = vector.shape_cast %34 : vector<1x4x128xbf16> to vector<4x128xbf16>
    %cst_25 = arith.constant dense<0.000000e+00> : vector<256x128xf32>
    %36 = tpu.matmul %33, %35, %cst_25 {dimension_numbers = #tpu.dot_dimension_numbers<[1], [0], [0], [1], [0, 0, 1, 1], [], []>} : vector<256x4xbf16>, vector<4x128xbf16>, vector<256x128xf32> -> vector<256x128xf32>
    %37 = arith.addf %28, %36 : vector<256x128xf32>
    %c1_i32_26 = arith.constant 1 : i32
    %38 = arith.addi %0, %c1_i32_26 : i32
    %c0_27 = arith.constant 0 : index
    %39 = arith.index_cast %38 : i32 to index
    %c1_28 = arith.constant 1 : index
    %c0_29 = arith.constant 0 : index
    %40 = vector.load %arg2[%c0_27, %39, %c1_28, %c0_29] : memref<1x18x18x4xbf16, #tpu.memory_space<vmem>>, vector<1x16x16x4xbf16>
    %41 = vector.shape_cast %40 : vector<1x16x16x4xbf16> to vector<16x16x4xbf16>
    %42 = vector.shape_cast %41 : vector<16x16x4xbf16> to vector<256x4xbf16>
    %c4 = arith.constant 4 : index
    %c0_30 = arith.constant 0 : index
    %c0_31 = arith.constant 0 : index
    %43 = vector.load %arg3[%c4, %c0_30, %c0_31] : memref<9x4x128xbf16, #tpu.memory_space<vmem>>, vector<1x4x128xbf16>
    %44 = vector.shape_cast %43 : vector<1x4x128xbf16> to vector<4x128xbf16>
    %cst_32 = arith.constant dense<0.000000e+00> : vector<256x128xf32>
    %45 = tpu.matmul %42, %44, %cst_32 {dimension_numbers = #tpu.dot_dimension_numbers<[1], [0], [0], [1], [0, 0, 1, 1], [], []>} : vector<256x4xbf16>, vector<4x128xbf16>, vector<256x128xf32> -> vector<256x128xf32>
    %46 = arith.addf %37, %45 : vector<256x128xf32>
    %c1_i32_33 = arith.constant 1 : i32
    %47 = arith.addi %0, %c1_i32_33 : i32
    %c0_34 = arith.constant 0 : index
    %48 = arith.index_cast %47 : i32 to index
    %c2_35 = arith.constant 2 : index
    %c0_36 = arith.constant 0 : index
    %49 = vector.load %arg2[%c0_34, %48, %c2_35, %c0_36] : memref<1x18x18x4xbf16, #tpu.memory_space<vmem>>, vector<1x16x16x4xbf16>
    %50 = vector.shape_cast %49 : vector<1x16x16x4xbf16> to vector<16x16x4xbf16>
    %51 = vector.shape_cast %50 : vector<16x16x4xbf16> to vector<256x4xbf16>
    %c5 = arith.constant 5 : index
    %c0_37 = arith.constant 0 : index
    %c0_38 = arith.constant 0 : index
    %52 = vector.load %arg3[%c5, %c0_37, %c0_38] : memref<9x4x128xbf16, #tpu.memory_space<vmem>>, vector<1x4x128xbf16>
    %53 = vector.shape_cast %52 : vector<1x4x128xbf16> to vector<4x128xbf16>
    %cst_39 = arith.constant dense<0.000000e+00> : vector<256x128xf32>
    %54 = tpu.matmul %51, %53, %cst_39 {dimension_numbers = #tpu.dot_dimension_numbers<[1], [0], [0], [1], [0, 0, 1, 1], [], []>} : vector<256x4xbf16>, vector<4x128xbf16>, vector<256x128xf32> -> vector<256x128xf32>
    %55 = arith.addf %46, %54 : vector<256x128xf32>
    %c2_i32 = arith.constant 2 : i32
    %56 = arith.addi %0, %c2_i32 : i32
    %c0_40 = arith.constant 0 : index
    %57 = arith.index_cast %56 : i32 to index
    %c0_41 = arith.constant 0 : index
    %c0_42 = arith.constant 0 : index
    %58 = vector.load %arg2[%c0_40, %57, %c0_41, %c0_42] : memref<1x18x18x4xbf16, #tpu.memory_space<vmem>>, vector<1x16x16x4xbf16>
    %59 = vector.shape_cast %58 : vector<1x16x16x4xbf16> to vector<16x16x4xbf16>
    %60 = vector.shape_cast %59 : vector<16x16x4xbf16> to vector<256x4xbf16>
    %c6 = arith.constant 6 : index
    %c0_43 = arith.constant 0 : index
    %c0_44 = arith.constant 0 : index
    %61 = vector.load %arg3[%c6, %c0_43, %c0_44] : memref<9x4x128xbf16, #tpu.memory_space<vmem>>, vector<1x4x128xbf16>
    %62 = vector.shape_cast %61 : vector<1x4x128xbf16> to vector<4x128xbf16>
    %cst_45 = arith.constant dense<0.000000e+00> : vector<256x128xf32>
    %63 = tpu.matmul %60, %62, %cst_45 {dimension_numbers = #tpu.dot_dimension_numbers<[1], [0], [0], [1], [0, 0, 1, 1], [], []>} : vector<256x4xbf16>, vector<4x128xbf16>, vector<256x128xf32> -> vector<256x128xf32>
    %64 = arith.addf %55, %63 : vector<256x128xf32>
    %c2_i32_46 = arith.constant 2 : i32
    %65 = arith.addi %0, %c2_i32_46 : i32
    %c0_47 = arith.constant 0 : index
    %66 = arith.index_cast %65 : i32 to index
    %c1_48 = arith.constant 1 : index
    %c0_49 = arith.constant 0 : index
    %67 = vector.load %arg2[%c0_47, %66, %c1_48, %c0_49] : memref<1x18x18x4xbf16, #tpu.memory_space<vmem>>, vector<1x16x16x4xbf16>
    %68 = vector.shape_cast %67 : vector<1x16x16x4xbf16> to vector<16x16x4xbf16>
    %69 = vector.shape_cast %68 : vector<16x16x4xbf16> to vector<256x4xbf16>
    %c7 = arith.constant 7 : index
    %c0_50 = arith.constant 0 : index
    %c0_51 = arith.constant 0 : index
    %70 = vector.load %arg3[%c7, %c0_50, %c0_51] : memref<9x4x128xbf16, #tpu.memory_space<vmem>>, vector<1x4x128xbf16>
    %71 = vector.shape_cast %70 : vector<1x4x128xbf16> to vector<4x128xbf16>
    %cst_52 = arith.constant dense<0.000000e+00> : vector<256x128xf32>
    %72 = tpu.matmul %69, %71, %cst_52 {dimension_numbers = #tpu.dot_dimension_numbers<[1], [0], [0], [1], [0, 0, 1, 1], [], []>} : vector<256x4xbf16>, vector<4x128xbf16>, vector<256x128xf32> -> vector<256x128xf32>
    %73 = arith.addf %64, %72 : vector<256x128xf32>
    %c2_i32_53 = arith.constant 2 : i32
    %74 = arith.addi %0, %c2_i32_53 : i32
    %c0_54 = arith.constant 0 : index
    %75 = arith.index_cast %74 : i32 to index
    %c2_55 = arith.constant 2 : index
    %c0_56 = arith.constant 0 : index
    %76 = vector.load %arg2[%c0_54, %75, %c2_55, %c0_56] : memref<1x18x18x4xbf16, #tpu.memory_space<vmem>>, vector<1x16x16x4xbf16>
    %77 = vector.shape_cast %76 : vector<1x16x16x4xbf16> to vector<16x16x4xbf16>
    %78 = vector.shape_cast %77 : vector<16x16x4xbf16> to vector<256x4xbf16>
    %c8 = arith.constant 8 : index
    %c0_57 = arith.constant 0 : index
    %c0_58 = arith.constant 0 : index
    %79 = vector.load %arg3[%c8, %c0_57, %c0_58] : memref<9x4x128xbf16, #tpu.memory_space<vmem>>, vector<1x4x128xbf16>
    %80 = vector.shape_cast %79 : vector<1x4x128xbf16> to vector<4x128xbf16>
    %cst_59 = arith.constant dense<0.000000e+00> : vector<256x128xf32>
    %81 = tpu.matmul %78, %80, %cst_59 {dimension_numbers = #tpu.dot_dimension_numbers<[1], [0], [0], [1], [0, 0, 1, 1], [], []>} : vector<256x4xbf16>, vector<4x128xbf16>, vector<256x128xf32> -> vector<256x128xf32>
    %82 = arith.addf %73, %81 : vector<256x128xf32>
    %c0_60 = arith.constant 0 : index
    %c0_61 = arith.constant 0 : index
    %83 = vector.load %arg4[%c0_60, %c0_61] : memref<1x128xf32, #tpu.memory_space<vmem>>, vector<1x128xf32>
    %84 = vector.broadcast %83 : vector<1x128xf32> to vector<256x128xf32>
    %85 = arith.addf %82, %84 : vector<256x128xf32>
    %cst_62 = arith.constant 0.000000e+00 : f32
    %86 = vector.broadcast %cst_62 : f32 to vector<256x128xf32>
    %87 = arith.maximumf %85, %86 : vector<256x128xf32>
    %88 = vector.shape_cast %87 : vector<256x128xf32> to vector<16x16x128xf32>
    %89 = arith.truncf %88 : vector<16x16x128xf32> to vector<16x16x128xbf16>
    %c0_63 = arith.constant 0 : index
    %c0_64 = arith.constant 0 : index
    %c0_65 = arith.constant 0 : index
    %c0_66 = arith.constant 0 : index
    %90 = vector.load %arg5[%c0_63, %c0_64, %c0_65, %c0_66] : memref<1x16x16x128xbf16, #tpu.memory_space<vmem>>, vector<1x16x16x128xbf16>
    %91 = vector.shape_cast %90 : vector<1x16x16x128xbf16> to vector<16x16x128xbf16>
    %92 = vector.shape_cast %89 : vector<16x16x128xbf16> to vector<1x16x16x128xbf16>
    tpu.vector_store %arg5[%c0_63, %c0_64, %c0_65, %c0_66], %92 {strides = array<i32>} : memref<1x16x16x128xbf16, #tpu.memory_space<vmem>>, vector<1x16x16x128xbf16>,
    return
  }
  func.func @transform_0(%arg0: i32, %arg1: i32) -> (i32, i32, i32, i32) {
    %c0_i32 = arith.constant 0 : i32
    %c0_i32_0 = arith.constant 0 : i32
    %c0_i32_1 = arith.constant 0 : i32
    %c0_i32_2 = arith.constant 0 : i32
    return %arg0, %c0_i32, %c0_i32_0, %c0_i32_1 : i32, i32, i32, i32
  }
  func.func @transform_1(%arg0: i32, %arg1: i32) -> (i32, i32, i32) {
    %c0_i32 = arith.constant 0 : i32
    %c0_i32_0 = arith.constant 0 : i32
    %c0_i32_1 = arith.constant 0 : i32
    %c0_i32_2 = arith.constant 0 : i32
    return %c0_i32, %c0_i32_0, %c0_i32_1 : i32, i32, i32
  }
  func.func @transform_2(%arg0: i32, %arg1: i32) -> (i32, i32) {
    %c0_i32 = arith.constant 0 : i32
    %c0_i32_0 = arith.constant 0 : i32
    %c0_i32_1 = arith.constant 0 : i32
    return %c0_i32, %c0_i32_0 : i32, i32
  }
  func.func @transform_3(%arg0: i32, %arg1: i32) -> (i32, i32, i32, i32) {
    %c0_i32 = arith.constant 0 : i32
    %c0_i32_0 = arith.constant 0 : i32
    %c0_i32_1 = arith.constant 0 : i32
    return %arg0, %arg1, %c0_i32, %c0_i32_0 : i32, i32, i32, i32
  }
}

</mosaic_0001>

<bundles_post_ra>
// kernel: conv_module_forward.1
= control target key start
LH: loop header
LB: loop body
LE: loop exit
PB: predicated region body
PF: predicated region fallthrough
CT: control target
= control target key end

     0   :  { %s6702_s12 = smov 0   ;;  %s6704_s13 = smov 0   ;;  %s8503_s0 = inlined_call_operand.vmem [shape: bf16[2,18,18,4], index: 0, kind: input, shape index: {}]   ;;  %s8504_s1 = inlined_call_operand.vmem [shape: bf16[9,4,128], index: 1, kind: input, shape index: {}]   ;;  %s8505_s2 = inlined_call_operand.vmem [shape: f32[1,128], index: 2, kind: input, shape index: {}]   ;;  %s8506_s3 = inlined_call_operand.vmem [shape: bf16[2,16,16,128], index: 3, kind: output, shape index: {}]  }
   0x1   :  { %s6706_s14 = smov 0  }
   0x2 LB: > { %s25_s15 = sadd.s32 1, %s6676_s13  ;;  %p5098_p0 = scmp.ge.s32.totalorder %s6680_s14, 1  ;;  %s6680_s14 = sphi %s6706_s14, %s13_s14   ;;  %s6676_s13 = sphi %s6704_s13, %s8575_s13   ;;  %s6672_s12 = sphi %s6702_s12, %s8574_s12  }
   0x3   : > { %p27_p1 = scmp.ge.s32.totalorder %s25_s15, 2  ;;  %p151_p2 = scmp.lt.s32.totalorder %s6680_s14, 3 }
   0x5   : > { %s8577_s15 = smov (%p27_p1, %s25_s15), 0  ;;  %p152_p3 = pnand %p5098_p0, %p151_p2 }
   0x7   : > { %155 = sbr.rel (%p152_p3) target bundleno = 590 (0x24e), region = 32 }
   0xe   : > { %v5102_v0 = vld [vmem:[%s8504_s1 + $0x2] sm:$0x3]  ;;  %vm736_vm0 = vcmask 1041408   ;;  %v5329_v1 = vld [vmem:[%s8504_s1 + $0x8] sm:$0x3]  ;;  %p180_p4 = scmp.lt.s32.totalorder %s6672_s12, 1 }
   0xf   : > { %6518 = vmatprep.subr.msk.bf16.mxu1 %vm736_vm0, %v5102_v0  ;;  %6522 = vmatprep.subr.msk.bf16.mxu0 %vm736_vm0, %v5329_v1  ;;  %v738_v2 = vsel %vm736_vm0, %v5102_v0, 0  ;;  %v6730_v3 = vsel %vm736_vm0, %v5329_v1, 0  ;;  %v233_v4 = vld [vmem:[%s8504_s1] sm:$0x3]  ;;  %v5394_v5 = vld [vmem:[%s8504_s1 + $0xa] sm:$0x3] }
  0x10   : > { %8520 = vst [vmem:[#allocation2_spill] sm:$0xff] %v6730_v3  ;;  %5955 = vmatpush3.bf16.msra.mxu1 %v738_v2  ;;  %6091 = vmatpush3.bf16.msra.mxu0 %v6730_v3  ;;  %s8579_s12 = smov (!%p180_p4, %s6672_s12), 1  ;;  %vm250_vm1 = vsmask.f32 3328  ;;  %vm251_vm2 = vsmask.f32 7440 }
  0x11   : > { %6519 = vmatprep.subr.msk.bf16.mxu1 %vm736_vm0, %v233_v4  ;;  %6524 = vmatprep.subr.msk.bf16.mxu0 %vm736_vm0, %v5394_v5  ;;  %s6528_s24 = smul.u32 216, %s8579_s12  ;;  %vm687_vm3 = vcmask 31744   ;;  %v6760_v17 = vsel %vm736_vm0, %v233_v4, 0  ;;  %v6766_v26 = vld [vmem:[%s8504_s1 + $0xc] sm:$0x3]  ;;  %vm6773_vm4 = vmor %vm250_vm1, %vm251_vm2  ;;  %v6779_v37 = vsel %vm736_vm0, %v5394_v5, 0 }
  0x12   : > { %v6783_v41 = vsel %vm736_vm0, %v6766_v26, 0  ;;  %vm1241_vm5 = vcmask 1042432   ;;  %vm1242_vm6 = vcmask 1046532   ;;  %s5673_s21 = sshll.u32 %s8579_s12, 7 }
  0x13   : > { %s6747_s27 = scalar_lea.vmem %s8503_s0, %s6528_s24  ;;  %vm6999_vm7 = vmor %vm1241_vm5, %vm1242_vm6  ;;  %s8444_s24 = scalar_lea.vmem %s8506_s3, %s5673_s21 }
  0x14   : > { %v201_v6 = vld [vmem:[%s6747_s27] sm:$0xf]  ;;  %v202_v7 = vld [vmem:[%s6747_s27 + $0x4] sm:$0xf]  ;;  %v234_v8 = vld [vmem:[%s6747_s27 + $0x8] sm:$0x1] }
  0x15   : > { %v254_v9 = vshrl.u32 %v201_v6, 16  ;;  %v257_v10 = vshll.u32 %v201_v6, 16  ;;  %v263_v11 = vshll.u32 %v202_v7, 16  ;;  %v267_v12 = vshrl.u32 %v202_v7, 16  ;;  %v5281_v13 = vld [vmem:[%s6747_s27 + $0xc] sm:$0xf] }
  0x16   : > { %v273_v14 = vshll.u32 %v234_v8, 16  ;;  %v6754_v15 = vld [vmem:[%s6747_s27 + $0x10] sm:$0xf]  ;;  %v6757_v16 = vld [vmem:[%s6747_s27 + $0x14] sm:$0x1]  ;;  %v2061_v23 = vshrl.u32 %v5281_v13, 16 }
  0x17   : > { %v256_v18 = vrot.slane %v254_v9, 4  ;;  %v259_v19 = vrot.slane %v257_v10, 5  ;;  %v265_v20 = vrot.slane %v263_v11, 5  ;;  %v269_v21 = vrot.slane %v267_v12, 4  ;;  %v203_v31 = vld [vmem:[%s6747_s27 + $0xc] sm:$0xf] }
  0x18   : > { %v275_v22 = vrot.slane %v273_v14, 5  ;;  %v2064_v24 = vshll.u32 %v5281_v13, 16  ;;  %v2070_v25 = vshll.u32 %v6754_v15, 16  ;;  %v2074_v29 = vshrl.u32 %v6754_v15, 16  ;;  %v204_v36 = vld [vmem:[%s6747_s27 + $0x10] sm:$0xf] }
  0x19   : > { %v260_v27 = vor.u32 %v259_v19, %v256_v18  ;;  %v270_v28 = vor.u32 %v269_v21, %v265_v20  ;;  %v2080_v30 = vshll.u32 %v6757_v16, 16  ;;  %v2063_v33 = vrot.slane %v2061_v23, 4  ;;  %v235_v44 = vld [vmem:[%s6747_s27 + $0x14] sm:$0x1]  ;;  %v5284_v55 = vld [vmem:[%s6747_s27 + $0x18] sm:$0xf] }
  0x1a   : > { %v2066_v34 = vrot.slane %v2064_v24, 5  ;;  %v2072_v35 = vrot.slane %v2070_v25, 5  ;;  %v2076_v40 = vrot.slane %v2074_v29, 4  ;;  %v278_v45 = vshrl.u32 %v203_v31, 16  ;;  %v6792_v60 = vld [vmem:[%s6747_s27 + $0x1c] sm:$0xf] }
  0x1b   : > { %v261_v38 = vrot.slane %v260_v27, 4  ;;  %v271_v39 = vrot.slane %v270_v28, 4  ;;  %v2082_v43 = vrot.slane %v2080_v30, 5  ;;  %v281_v46 = vshll.u32 %v203_v31, 16  ;;  %v6800_v1 = vld [vmem:[%s6747_s27 + $0x20] sm:$0x1] }
  0x1c   : > { %v2067_v42 = vor.u32 %v2066_v34, %v2063_v33  ;;  %v2077_v49 = vor.u32 %v2076_v40, %v2072_v35  ;;  %v287_v50 = vshll.u32 %v204_v36, 16  ;;  %v280_v53 = vrot.slane %v278_v45, 4  ;;  %v205_v18 = vld [vmem:[%s6747_s27 + $0x18] sm:$0xf]  ;;  %v206_v23 = vld [vmem:[%s6747_s27 + $0x1c] sm:$0xf] }
  0x1d   : > { %v266_v47 = vsel %vm6773_vm4, %v261_v38, %v265_v20  ;;  %v276_v48 = vsel %vm6773_vm4, %v271_v39, %v275_v22  ;;  %v283_v54 = vrot.slane %v281_v46, 5  ;;  %v291_v58 = vshrl.u32 %v204_v36, 16  ;;  %v236_v31 = vld [vmem:[%s6747_s27 + $0x20] sm:$0x1]  ;;  %v5287_v40 = vld [vmem:[%s6747_s27 + $0x24] sm:$0xf] }
  0x1e   : > { %v5103_v51 = vcombine.low %v266_v47, %v276_v48  ;;  %v2068_v52 = vrot.slane %v2067_v42, 4  ;;  %v2078_v56 = vrot.slane %v2077_v49, 4  ;;  %v289_v57 = vrot.slane %v287_v50, 5  ;;  %v6823_v46 = vld [vmem:[%s6747_s27 + $0x28] sm:$0xf] }
  0x1f   : > { %v297_v59 = vshll.u32 %v235_v44, 16  ;;  %v2804_v62 = vrot.slane %v6754_v15, 5  ;;  %v2807_v63 = vrot.slane %v6757_v16, 5  ;;  %v284_v0 = vor.u32 %v283_v54, %v280_v53  ;;  %v6832_v54 = vld [vmem:[%s6747_s27 + $0x2c] sm:$0x1] }
  0x20   : > { %5956 = vmatprep.mubr.msk.bf16.mxu1 %vm687_vm3, %v5103_v51  ;;  %v2073_v61 = vsel %vm6773_vm4, %v2068_v52, %v2072_v35  ;;  %v2083_v2 = vsel %vm6773_vm4, %v2078_v56, %v2082_v43  ;;  %v293_v4 = vrot.slane %v291_v58, 4  ;;  %v2085_v6 = vshrl.u32 %v5284_v55, 16  ;;  %v5183_v51 = vld [vmem:[%s8504_s1 + $0x4] sm:$0x3]  ;;  %v7032_v16 = vld [vmem:[%s6747_s27 + $0x7c] sm:$0xf] }
  0x21   : > { %v299_v5 = vrot.slane %v297_v59, 5  ;;  %v5330_v7 = vcombine.low %v2073_v61, %v2083_v2  ;;  %v285_v8 = vrot.slane %v284_v0, 4  ;;  %v2088_v9 = vshll.u32 %v5284_v55, 16  ;;  %v207_v0 = vld [vmem:[%s6747_s27 + $0x24] sm:$0xf] }
  0x22   : > { %v2094_v10 = vshll.u32 %v6792_v60, 16  ;;  %v294_v11 = vor.u32 %v293_v4, %v289_v57  ;;  %v2087_v12 = vrot.slane %v2085_v6, 4  ;;  %v2098_v13 = vshrl.u32 %v6792_v60, 16 }
  0x23   : > { %v2104_v14 = vshll.u32 %v6800_v1, 16  ;;  %6092 = vmatprep.mubr.msk.bf16.mxu0 %vm687_vm3, %v5330_v7  ;;  %v290_v19 = vsel %vm6773_vm4, %v285_v8, %v289_v57  ;;  %v2090_v20 = vrot.slane %v2088_v9, 5  ;;  %v2811_v22 = vrot.slane %v6792_v60, 5  ;;  %v208_v7 = vld [vmem:[%s6747_s27 + $0x28] sm:$0xf] }
  0x24   : > { %v2096_v21 = vrot.slane %v2094_v10, 5  ;;  %v295_v24 = vrot.slane %v294_v11, 4  ;;  %v2100_v25 = vrot.slane %v2098_v13, 4  ;;  %v2814_v28 = vrot.slane %v6800_v1, 5  ;;  %v237_v13 = vld [vmem:[%s6747_s27 + $0x2c] sm:$0x1] }
  0x25   : > { %v2106_v27 = vrot.slane %v2104_v14, 5  ;;  %v2091_v29 = vor.u32 %v2090_v20, %v2087_v12  ;;  %v6816_v30 = vrot.slane %v2811_v22, 4  ;;  %v302_v33 = vshrl.u32 %v205_v18, 16 }
  0x26   : > { %v305_v34 = vshll.u32 %v205_v18, 16  ;;  %v300_v35 = vsel %vm6773_vm4, %v295_v24, %v299_v5  ;;  %v2101_v36 = vor.u32 %v2100_v25, %v2096_v21  ;;  %v311_v38 = vshll.u32 %v206_v23, 16  ;;  %v5290_v24 = vld [vmem:[%s6747_s27 + $0x30] sm:$0xf] }
  0x27   : > { %v315_v39 = vshrl.u32 %v206_v23, 16  ;;  %v5104_v42 = vcombine.low %v290_v19, %v300_v35  ;;  %v2092_v43 = vrot.slane %v2091_v29, 4  ;;  %v304_v44 = vrot.slane %v302_v33, 4  ;;  %v6852_v33 = vld [vmem:[%s6747_s27 + $0x34] sm:$0xf] }
  0x28   : > { %v307_v45 = vrot.slane %v305_v34, 5  ;;  %v2102_v47 = vrot.slane %v2101_v36, 4  ;;  %v313_v48 = vrot.slane %v311_v38, 5  ;;  %v321_v50 = vshll.u32 %v236_v31, 16 }
  0x29   : > { %v317_v49 = vrot.slane %v315_v39, 4  ;;  %5957 = vmatmul.mubr.msk.bf16.vlgmr.msra.gmra.mrb[0].mxu1 %vm687_vm3, %v5104_v42  ;;  %v2097_v52 = vsel %vm6773_vm4, %v2092_v43, %v2096_v21  ;;  %v2109_v55 = vshrl.u32 %v5287_v40, 16  ;;  %v2112_v56 = vshll.u32 %v5287_v40, 16  ;;  %v6860_v40 = vld [vmem:[%s6747_s27 + $0x38] sm:$0x1] }
  0x2a   : > { %v308_v53 = vor.u32 %v307_v45, %v304_v44  ;;  %5989 = vmatpush3.bf16.msra.mxu1 %v6760_v17  ;;  %v2107_v57 = vsel %vm6773_vm4, %v2102_v47, %v2106_v27  ;;  %v323_v59 = vrot.slane %v321_v50, 5  ;;  %v2118_v61 = vshll.u32 %v6823_v46, 16 }
  0x2b   : > { %v318_v58 = vor.u32 %v317_v49, %v313_v48  ;;  %v5331_v2 = vcombine.low %v2097_v52, %v2107_v57  ;;  %v2111_v5 = vrot.slane %v2109_v55, 4  ;;  %v2114_v6 = vrot.slane %v2112_v56, 5  ;;  %6520 = vmatprep.subr.msk.bf16.mxu1 %vm736_vm0, %v5183_v51  ;;  %v209_v52 = vld [vmem:[%s6747_s27 + $0x30] sm:$0xf] }
  0x2c   : > { %v309_v4 = vrot.slane %v308_v53, 4  ;;  %v2120_v9 = vrot.slane %v2118_v61, 5  ;;  %v2122_v17 = vshrl.u32 %v6823_v46, 16  ;;  %v2128_v10 = vshll.u32 %v6832_v54, 16 }
  0x2d   : > { %v319_v8 = vrot.slane %v318_v58, 4  ;;  %6093 = vmatmul.mubr.msk.bf16.vlgmr.msra.gmra.mrb[0].mxu0 %vm687_vm3, %v5331_v2  ;;  %v2115_v12 = vor.u32 %v2114_v6, %v2111_v5  ;;  %v326_v14 = vshrl.u32 %v207_v0, 16  ;;  %v329_v18 = vshll.u32 %v207_v0, 16  ;;  %v210_v58 = vld [vmem:[%s6747_s27 + $0x34] sm:$0xf] }
  0x2e   : > { %v314_v11 = vsel %vm6773_vm4, %v309_v4, %v313_v48  ;;  %6125 = vmatpush3.bf16.msra.mxu0 %v6779_v37  ;;  %v2124_v20 = vrot.slane %v2122_v17, 4  ;;  %v2130_v21 = vrot.slane %v2128_v10, 5  ;;  %v335_v23 = vshll.u32 %v208_v7, 16  ;;  %v238_v4 = vld [vmem:[%s6747_s27 + $0x38] sm:$0x1] }
  0x2f   : > { %v324_v19 = vsel %vm6773_vm4, %v319_v8, %v323_v59  ;;  %v2116_v27 = vrot.slane %v2115_v12, 4  ;;  %v328_v29 = vrot.slane %v326_v14, 4  ;;  %v331_v31 = vrot.slane %v329_v18, 5  ;;  %6525 = vmatprep.subr.msk.bf16.mxu0 %vm736_vm0, %v6766_v26  ;;  %v5293_v12 = vld [vmem:[%s6747_s27 + $0x3c] sm:$0xf] }
  0x30   : > { %v5105_v25 = vcombine.low %v314_v11, %v324_v19  ;;  %v2125_v34 = vor.u32 %v2124_v20, %v2120_v9  ;;  %v337_v35 = vrot.slane %v335_v23, 5  ;;  %v339_v37 = vshrl.u32 %v208_v7, 16  ;;  %v6877_v20 = vld [vmem:[%s6747_s27 + $0x40] sm:$0xf] }
  0x31   : > { %v345_v36 = vshll.u32 %v237_v13, 16  ;;  %v2121_v38 = vsel %vm6773_vm4, %v2116_v27, %v2120_v9  ;;  %v332_v39 = vor.u32 %v331_v31, %v328_v29  ;;  %v2133_v42 = vshrl.u32 %v5290_v24, 16 }
  0x32   : > { %5960 = vmatprep.mubr.msk.bf16.mxu1 %vm687_vm3, %v5105_v25  ;;  %v2136_v43 = vshll.u32 %v5290_v24, 16  ;;  %v2126_v44 = vrot.slane %v2125_v34, 4  ;;  %v341_v45 = vrot.slane %v339_v37, 4  ;;  %v2142_v26 = vshll.u32 %v6852_v33, 16  ;;  %v6882_v34 = vld [vmem:[%s6747_s27 + $0x44] sm:$0x1] }
  0x33   : > { %v347_v47 = vrot.slane %v345_v36, 5  ;;  %v333_v48 = vrot.slane %v332_v39, 4  ;;  %v2135_v49 = vrot.slane %v2133_v42, 4  ;;  %v2146_v51 = vshrl.u32 %v6852_v33, 16  ;;  %v211_v42 = vld [vmem:[%s6747_s27 + $0x3c] sm:$0xf] }
  0x34   : > { %v2138_v50 = vrot.slane %v2136_v43, 5  ;;  %v2131_v53 = vsel %vm6773_vm4, %v2126_v44, %v2130_v21  ;;  %v342_v55 = vor.u32 %v341_v45, %v337_v35  ;;  %v2144_v56 = vrot.slane %v2142_v26, 5  ;;  %v212_v26 = vld [vmem:[%s6747_s27 + $0x40] sm:$0xf] }
  0x35   : > { %v2152_v57 = vshll.u32 %v6860_v40, 16  ;;  %v5332_v59 = vcombine.low %v2121_v38, %v2131_v53  ;;  %v338_v61 = vsel %vm6773_vm4, %v333_v48, %v337_v35  ;;  %v2148_v2 = vrot.slane %v2146_v51, 4 }
  0x36   : > { %v2139_v0 = vor.u32 %v2138_v50, %v2135_v49  ;;  %v343_v5 = vrot.slane %v342_v55, 4  ;;  %v350_v7 = vshrl.u32 %v209_v52, 16  ;;  %v353_v8 = vshll.u32 %v209_v52, 16 }
  0x37   : > { %v2154_v6 = vrot.slane %v2152_v57, 5  ;;  %6096 = vmatprep.mubr.msk.bf16.mxu0 %vm687_vm3, %v5332_v59  ;;  %v2149_v17 = vor.u32 %v2148_v2, %v2144_v56  ;;  %v359_v10 = vshll.u32 %v210_v58, 16  ;;  %v363_v11 = vshrl.u32 %v210_v58, 16  ;;  %v5296_v2 = vld [vmem:[%s6747_s27 + $0x48] sm:$0xf] }
  0x38   : > { %v2140_v9 = vrot.slane %v2139_v0, 4  ;;  %v348_v13 = vsel %vm6773_vm4, %v343_v5, %v347_v47  ;;  %v352_v14 = vrot.slane %v350_v7, 4  ;;  %v355_v18 = vrot.slane %v353_v8, 5  ;;  %v6900_v8 = vld [vmem:[%s6747_s27 + $0x4c] sm:$0xf] }
  0x39   : > { %v369_v19 = vshll.u32 %v238_v4, 16  ;;  %v5106_v21 = vcombine.low %v338_v61, %v348_v13  ;;  %v2150_v24 = vrot.slane %v2149_v17, 4  ;;  %v361_v25 = vrot.slane %v359_v10, 5  ;;  %v239_v61 = vld [vmem:[%s6747_s27 + $0x44] sm:$0x1] }
  0x3a   : > { %v2145_v23 = vsel %vm6773_vm4, %v2140_v9, %v2144_v56  ;;  %v356_v27 = vor.u32 %v355_v18, %v352_v14  ;;  %v365_v29 = vrot.slane %v363_v11, 4  ;;  %v2157_v35 = vshrl.u32 %v5293_v12, 16 }
  0x3b   : > { %v371_v31 = vrot.slane %v369_v19, 5  ;;  %5961 = vmatmul.mubr.msk.bf16.gmra.mrb[4].mxu1 %vm687_vm3, %v5106_v21  ;;  %v2155_v37 = vsel %vm6773_vm4, %v2150_v24, %v2154_v6  ;;  %v2160_v36 = vshll.u32 %v5293_v12, 16  ;;  %v2166_v38 = vshll.u32 %v6877_v20, 16 }
  0x3c   : > { %v2170_v39 = vshrl.u32 %v6877_v20, 16  ;;  %v5333_v43 = vcombine.low %v2145_v23, %v2155_v37  ;;  %v357_v44 = vrot.slane %v356_v27, 4  ;;  %v366_v45 = vor.u32 %v365_v29, %v361_v25  ;;  %v6908_v23 = vld [vmem:[%s6747_s27 + $0x50] sm:$0x1]  ;;  %v6912_v27 = vld [vmem:[%s6747_s27 + $0x48] sm:$0xf] }
  0x3d   : > { %v2159_v47 = vrot.slane %v2157_v35, 4  ;;  %v2162_v48 = vrot.slane %v2160_v36, 5  ;;  %v2168_v49 = vrot.slane %v2166_v38, 5  ;;  %v2176_v51 = vshll.u32 %v6882_v34, 16  ;;  %v6915_v36 = vld [vmem:[%s6747_s27 + $0x4c] sm:$0xf] }
  0x3e   : > { %v2172_v50 = vrot.slane %v2170_v39, 4  ;;  %6097 = vmatmul.mubr.msk.bf16.gmra.mrb[4].mxu0 %vm687_vm3, %v5333_v43  ;;  %v362_v52 = vsel %vm6773_vm4, %v357_v44, %v361_v25  ;;  %v367_v53 = vrot.slane %v366_v45, 4  ;;  %v374_v55 = vshrl.u32 %v211_v42, 16 }
  0x3f   : > { %v377_v56 = vshll.u32 %v211_v42, 16  ;;  %v2163_v57 = vor.u32 %v2162_v48, %v2159_v47  ;;  %v2178_v59 = vrot.slane %v2176_v51, 5  ;;  %v383_v0 = vshll.u32 %v212_v26, 16 }
  0x40   : > { %v2173_v58 = vor.u32 %v2172_v50, %v2168_v49  ;;  %v372_v4 = vsel %vm6773_vm4, %v367_v53, %v371_v31  ;;  %v376_v5 = vrot.slane %v374_v55, 4  ;;  %v387_v7 = vshrl.u32 %v212_v26, 16  ;;  %v240_v26 = vld [vmem:[%s6747_s27 + $0x50] sm:$0x1]  ;;  %v5299_v53 = vld [vmem:[%s6747_s27 + $0x54] sm:$0xf] }
  0x41   : > { %v379_v6 = vrot.slane %v377_v56, 5  ;;  %v5107_v9 = vcombine.low %v362_v52, %v372_v4  ;;  %v2164_v17 = vrot.slane %v2163_v57, 4  ;;  %v385_v11 = vrot.slane %v383_v0, 5  ;;  %v6931_v4 = vld [vmem:[%s6747_s27 + $0x58] sm:$0xf] }
  0x42   : > { %v2174_v10 = vrot.slane %v2173_v58, 4  ;;  %v389_v13 = vrot.slane %v387_v7, 4  ;;  %v393_v14 = vshll.u32 %v239_v61, 16  ;;  %v2181_v18 = vshrl.u32 %v5296_v2, 16 }
  0x43   : > { %v380_v12 = vor.u32 %v379_v6, %v376_v5  ;;  %5964 = vmatprep.mubr.msk.bf16.mxu1 %vm687_vm3, %v5107_v9  ;;  %v2169_v19 = vsel %vm6773_vm4, %v2164_v17, %v2168_v49  ;;  %v2184_v24 = vshll.u32 %v5296_v2, 16  ;;  %v2190_v25 = vshll.u32 %v6900_v8, 16 }
  0x44   : > { %v2179_v21 = vsel %vm6773_vm4, %v2174_v10, %v2178_v59  ;;  %v390_v35 = vor.u32 %v389_v13, %v385_v11  ;;  %v395_v37 = vrot.slane %v393_v14, 5  ;;  %v2183_v38 = vrot.slane %v2181_v18, 4 }
  0x45   : > { %v5334_v29 = vcombine.low %v2169_v19, %v2179_v21  ;;  %v381_v31 = vrot.slane %v380_v12, 4  ;;  %v2186_v39 = vrot.slane %v2184_v24, 5  ;;  %v2192_v42 = vrot.slane %v2190_v25, 5  ;;  %v6937_v12 = vld [vmem:[%s6747_s27 + $0x5c] sm:$0x1] }
  0x46   : > { %v2194_v43 = vshrl.u32 %v6900_v8, 16  ;;  %v391_v45 = vrot.slane %v390_v35, 4  ;;  %v2200_v47 = vshll.u32 %v6908_v23, 16  ;;  %v398_v48 = vshrl.u32 %v6912_v27, 16  ;;  %v6941_v24 = vld [vmem:[%s6747_s27 + $0x54] sm:$0xf] }
  0x47   : > { %6100 = vmatprep.mubr.msk.bf16.mxu0 %vm687_vm3, %v5334_v29  ;;  %v386_v44 = vsel %vm6773_vm4, %v381_v31, %v385_v11  ;;  %v2187_v49 = vor.u32 %v2186_v39, %v2183_v38  ;;  %v401_v51 = vshll.u32 %v6912_v27, 16  ;;  %v407_v52 = vshll.u32 %v6915_v36, 16 }
  0x48   : > { %v2196_v50 = vrot.slane %v2194_v43, 4  ;;  %v396_v55 = vsel %vm6773_vm4, %v391_v45, %v395_v37  ;;  %v2202_v56 = vrot.slane %v2200_v47, 5  ;;  %v400_v57 = vrot.slane %v398_v48, 4  ;;  %v6947_v37 = vld [vmem:[%s6747_s27 + $0x58] sm:$0xf] }
  0x49   : > { %v411_v58 = vshrl.u32 %v6915_v36, 16  ;;  %v5108_v59 = vcombine.low %v386_v44, %v396_v55  ;;  %v2188_v61 = vrot.slane %v2187_v49, 4  ;;  %v403_v2 = vrot.slane %v401_v51, 5 }
  0x4a   : > { %v2197_v0 = vor.u32 %v2196_v50, %v2192_v42  ;;  %v409_v5 = vrot.slane %v407_v52, 5  ;;  %v417_v7 = vshll.u32 %v240_v26, 16  ;;  %v2205_v9 = vshrl.u32 %v5299_v53, 16  ;;  %v241_v26 = vld [vmem:[%s6747_s27 + $0x5c] sm:$0x1] }
  0x4b   : > { %v413_v6 = vrot.slane %v411_v58, 4  ;;  %5965 = vmatmul.mubr.msk.bf16.gmra.mrb[8].mxu1 %vm687_vm3, %v5108_v59  ;;  %v2193_v17 = vsel %vm6773_vm4, %v2188_v61, %v2192_v42  ;;  %v404_v11 = vor.u32 %v403_v2, %v400_v57  ;;  %v2208_v13 = vshll.u32 %v5299_v53, 16  ;;  %v5302_v53 = vld [vmem:[%s6747_s27 + $0x60] sm:$0xf]  ;;  %v6961_v59 = vld [vmem:[%s6747_s27 + $0x64] sm:$0xf] }
  0x4c   : > { %v2198_v10 = vrot.slane %v2197_v0, 4  ;;  %v419_v18 = vrot.slane %v417_v7, 5  ;;  %v2207_v19 = vrot.slane %v2205_v9, 4  ;;  %v2214_v21 = vshll.u32 %v6931_v4, 16  ;;  %v6968_v9 = vld [vmem:[%s6747_s27 + $0x68] sm:$0x1] }
  0x4d   : > { %v414_v14 = vor.u32 %v413_v6, %v409_v5  ;;  %v405_v29 = vrot.slane %v404_v11, 4  ;;  %v2210_v31 = vrot.slane %v2208_v13, 5  ;;  %v2218_v35 = vshrl.u32 %v6931_v4, 16 }
  0x4e   : > { %v2203_v25 = vsel %vm6773_vm4, %v2198_v10, %v2202_v56  ;;  %v2216_v42 = vrot.slane %v2214_v21, 5  ;;  %v2224_v43 = vshll.u32 %v6937_v12, 16  ;;  %v422_v48 = vshrl.u32 %v6941_v24, 16 }
  0x4f   : > { %v5335_v38 = vcombine.low %v2193_v17, %v2203_v25  ;;  %v415_v39 = vrot.slane %v414_v14, 4  ;;  %v410_v44 = vsel %vm6773_vm4, %v405_v29, %v409_v5  ;;  %v2211_v45 = vor.u32 %v2210_v31, %v2207_v19  ;;  %v6972_v19 = vld [vmem:[%s6747_s27 + $0x60] sm:$0xf] }
  0x50   : > { %v2220_v47 = vrot.slane %v2218_v35, 4  ;;  %v2226_v50 = vrot.slane %v2224_v43, 5  ;;  %v425_v51 = vshll.u32 %v6941_v24, 16  ;;  %v431_v52 = vshll.u32 %v6947_v37, 16  ;;  %v6978_v35 = vld [vmem:[%s6747_s27 + $0x64] sm:$0xf] }
  0x51   : > { %6101 = vmatmul.mubr.msk.bf16.gmra.mrb[8].mxu0 %vm687_vm3, %v5335_v38  ;;  %v420_v49 = vsel %vm6773_vm4, %v415_v39, %v419_v18  ;;  %v2212_v56 = vrot.slane %v2211_v45, 4  ;;  %v424_v58 = vrot.slane %v422_v48, 4  ;;  %v435_v2 = vshrl.u32 %v6947_v37, 16 }
  0x52   : > { %v5109_v55 = vcombine.low %v410_v44, %v420_v49  ;;  %v2221_v57 = vor.u32 %v2220_v47, %v2216_v42  ;;  %v427_v61 = vrot.slane %v425_v51, 5  ;;  %v433_v0 = vrot.slane %v431_v52, 5 }
  0x53   : > { %v441_v5 = vshll.u32 %v241_v26, 16  ;;  %v2217_v6 = vsel %vm6773_vm4, %v2212_v56, %v2216_v42  ;;  %v2229_v17 = vshrl.u32 %v5302_v53, 16  ;;  %v2232_v10 = vshll.u32 %v5302_v53, 16 }
  0x54   : > { %5968 = vmatprep.mubr.msk.bf16.mxu1 %vm687_vm3, %v5109_v55  ;;  %v2222_v7 = vrot.slane %v2221_v57, 4  ;;  %v428_v11 = vor.u32 %v427_v61, %v424_v58  ;;  %v437_v13 = vrot.slane %v435_v2, 4  ;;  %v2238_v18 = vshll.u32 %v6961_v59, 16  ;;  %v5362_v58 = vld [vmem:[%s6747_s27 + $0xc] sm:$0xe] }
  0x55   : > { %v443_v14 = vrot.slane %v441_v5, 5  ;;  %v2231_v25 = vrot.slane %v2229_v17, 4  ;;  %v2234_v29 = vrot.slane %v2232_v10, 5  ;;  %v2242_v31 = vshrl.u32 %v6961_v59, 16 }
  0x56   : > { %v2227_v21 = vsel %vm6773_vm4, %v2222_v7, %v2226_v50  ;;  %v429_v39 = vrot.slane %v428_v11, 4  ;;  %v438_v42 = vor.u32 %v437_v13, %v433_v0  ;;  %v2240_v43 = vrot.slane %v2238_v18, 5  ;;  %v242_v50 = vld [vmem:[%s6747_s27 + $0x68] sm:$0x1] }
  0x57   : > { %v5336_v38 = vcombine.low %v2217_v6, %v2227_v21  ;;  %v2235_v44 = vor.u32 %v2234_v29, %v2231_v25  ;;  %v2244_v45 = vrot.slane %v2242_v31, 4  ;;  %v2248_v47 = vshll.u32 %v6968_v9, 16  ;;  %v7006_v29 = vld [vmem:[%s6747_s27 + $0x70] sm:$0xf] }
  0x58   : > { %v446_v26 = vshrl.u32 %v6972_v19, 16  ;;  %v434_v48 = vsel %vm6773_vm4, %v429_v39, %v433_v0  ;;  %v439_v49 = vrot.slane %v438_v42, 4  ;;  %v449_v51 = vshll.u32 %v6972_v19, 16  ;;  %v6993_v0 = vld [vmem:[%s6747_s27 + $0x6c] sm:$0xf] }
  0x59   : > { %6104 = vmatprep.mubr.msk.bf16.mxu0 %vm687_vm3, %v5336_v38  ;;  %v455_v52 = vshll.u32 %v6978_v35, 16  ;;  %v2236_v53 = vrot.slane %v2235_v44, 4  ;;  %v2245_v55 = vor.u32 %v2244_v45, %v2240_v43  ;;  %v2250_v56 = vrot.slane %v2248_v47, 5 }
  0x5a   : > { %v448_v57 = vrot.slane %v446_v26, 4  ;;  %v444_v61 = vsel %vm6773_vm4, %v439_v49, %v443_v14  ;;  %v451_v2 = vrot.slane %v449_v51, 5  ;;  %v459_v6 = vshrl.u32 %v6978_v35, 16  ;;  %v243_v26 = vld [vmem:[%s6747_s27 + $0x74] sm:$0x1] }
  0x5b   : > { %v457_v5 = vrot.slane %v455_v52, 5  ;;  %v5110_v7 = vcombine.low %v434_v48, %v444_v61  ;;  %v2241_v17 = vsel %vm6773_vm4, %v2236_v53, %v2240_v43  ;;  %v2246_v10 = vrot.slane %v2245_v55, 4  ;;  %v5363_v48 = vld [vmem:[%s6747_s27 + $0x18] sm:$0xe] }
  0x5c   : > { %v465_v11 = vshll.u32 %v242_v50, 16  ;;  %v452_v14 = vor.u32 %v451_v2, %v448_v57  ;;  %v461_v18 = vrot.slane %v459_v6, 4  ;;  %v5378_v21 = vrot.slane %v5362_v58, 9  ;;  %v7025_v53 = vld [vmem:[%s6747_s27 + $0x78] sm:$0xf] }
  0x5d   : > { %v2806_v25 = vrot.slane %v2804_v62, 4  ;;  %5969 = vmatmul.mubr.msk.bf16.gmra.mrb[12].mxu1 %vm687_vm3, %v5110_v7  ;;  %v2251_v31 = vsel %vm6773_vm4, %v2246_v10, %v2250_v56  ;;  %v470_v39 = vshrl.u32 %v6993_v0, 16  ;;  %v473_v42 = vshll.u32 %v6993_v0, 16  ;;  %v244_v57 = vld [vmem:[%s6747_s27 + $0x80] sm:$0x1] }
  0x5e   : > { %v467_v38 = vrot.slane %v465_v11, 5  ;;  %v5337_v43 = vcombine.low %v2241_v17, %v2251_v31  ;;  %v453_v44 = vrot.slane %v452_v14, 4  ;;  %v462_v45 = vor.u32 %v461_v18, %v457_v5  ;;  %v5364_v10 = vld [vmem:[%s6747_s27 + $0x24] sm:$0xe] }
  0x5f   : > { %v2805_v47 = vsel %vm6999_vm7, %v5378_v21, %v2804_v62  ;;  %v2808_v49 = vsel %vm6999_vm7, %v2806_v25, %v2807_v63  ;;  %v472_v50 = vrot.slane %v470_v39, 4  ;;  %v475_v51 = vrot.slane %v473_v42, 5  ;;  %v7051_v39 = vld [vmem:[%s6747_s27 + $0x84] sm:$0xf] }
  0x60   : > { %v479_v52 = vshll.u32 %v7006_v29, 16  ;;  %6105 = vmatmul.mubr.msk.bf16.gmra.mrb[12].mxu0 %vm687_vm3, %v5337_v43  ;;  %v458_v15 = vsel %vm6773_vm4, %v453_v44, %v457_v5  ;;  %v463_v62 = vrot.slane %v462_v45, 4  ;;  %v5395_v55 = vcombine.low %v2805_v47, %v2808_v49  ;;  %v7059_v43 = vld [vmem:[%s6747_s27 + $0x88] sm:$0xf] }
  0x61   : > { %v483_v56 = vshrl.u32 %v7006_v29, 16  ;;  %v476_v63 = vor.u32 %v475_v51, %v472_v50  ;;  %v489_v61 = vshll.u32 %v243_v26, 16  ;;  %v5379_v2 = vrot.slane %v5363_v48, 9 }
  0x62   : > { %v481_v58 = vrot.slane %v479_v52, 5  ;;  %v468_v6 = vsel %vm6773_vm4, %v463_v62, %v467_v38  ;;  %6126 = vmatprep.mubr.msk.bf16.mxu0 %vm687_vm3, %v5395_v55  ;;  %v2815_v5 = vsel %vm6999_vm7, %v6816_v30, %v2814_v28  ;;  %v494_v17 = vshrl.u32 %v7025_v53, 16  ;;  %v245_v52 = vld [vmem:[%s6747_s27 + $0x8c] sm:$0x1] }
  0x63   : > { %v485_v7 = vrot.slane %v483_v56, 4  ;;  %v5111_v11 = vcombine.low %v458_v15, %v468_v6  ;;  %v477_v14 = vrot.slane %v476_v63, 4  ;;  %v491_v18 = vrot.slane %v489_v61, 5 }
  0x64   : > { %v2812_v21 = vsel %vm6999_vm7, %v5379_v2, %v2811_v22  ;;  %v496_v38 = vrot.slane %v494_v17, 4  ;;  %v497_v1 = vshll.u32 %v7025_v53, 16  ;;  %v503_v30 = vshll.u32 %v7032_v16, 16  ;;  %v7064_v22 = vld [vmem:[%s8504_s1 + $0xe] sm:$0x3] }
  0x65   : > { %v486_v25 = vor.u32 %v485_v7, %v481_v58  ;;  %v5396_v31 = vcombine.low %v2812_v21, %v2815_v5  ;;  %5972 = vmatprep.mubr.msk.bf16.mxu1 %vm687_vm3, %v5111_v11  ;;  %v482_v28 = vsel %vm6773_vm4, %v477_v14, %v481_v58  ;;  %v507_v60 = vshrl.u32 %v7032_v16, 16  ;;  %v7083_v5 = vld [vmem:[%s6747_s27 + $0x90] sm:$0xf] }
  0x66   : > { %v513_v42 = vshll.u32 %v244_v57, 16  ;;  %v499_v45 = vrot.slane %v497_v1, 5  ;;  %v5380_v47 = vrot.slane %v5364_v10, 9  ;;  %v2818_v26 = vrot.slane %v6823_v46, 5  ;;  %v5365_v57 = vld [vmem:[%s6747_s27 + $0x30] sm:$0xe] }
  0x67   : > { %v487_v44 = vrot.slane %v486_v25, 4  ;;  %v505_v48 = vrot.slane %v503_v30, 5  ;;  %v509_v49 = vrot.slane %v507_v60, 4  ;;  %v2821_v51 = vrot.slane %v6832_v54, 5  ;;  %v7095_v30 = vld [vmem:[%s6747_s27 + $0x94] sm:$0xf] }
  0x68   : > { %v515_v50 = vrot.slane %v513_v42, 5  ;;  %6127 = vmatmul.mubr.msk.bf16.vlgmr.msra.gmra.mrb[0].mxu0 %vm687_vm3, %v5396_v31  ;;  %v500_v62 = vor.u32 %v499_v45, %v496_v38  ;;  %v2819_v55 = vsel %vm6999_vm7, %v5380_v47, %v2818_v26  ;;  %v2820_v56 = vrot.slane %v2818_v26, 4  ;;  %v246_v60 = vld [vmem:[%s6747_s27 + $0x98] sm:$0x1]  ;;  %v5366_v26 = vld [vmem:[%s6747_s27 + $0x3c] sm:$0xe] }
  0x69   : > { %v492_v15 = vsel %vm6773_vm4, %v487_v44, %v491_v18  ;;  %6159 = vmatpush3.bf16.msra.mxu0 %v6783_v41  ;;  %v510_v46 = vor.u32 %v509_v49, %v505_v48  ;;  %v518_v58 = vshrl.u32 %v7051_v39, 16  ;;  %v521_v54 = vshll.u32 %v7051_v39, 16 }
  0x6a   : > { %v5112_v63 = vcombine.low %v482_v28, %v492_v15  ;;  %v501_v61 = vrot.slane %v500_v62, 4  ;;  %v2822_v2 = vsel %vm6999_vm7, %v2820_v56, %v2821_v51  ;;  %v527_v6 = vshll.u32 %v7059_v43, 16  ;;  %6526 = vmatprep.subr.msk.bf16.mxu0 %vm736_vm0, %v7064_v22 }
  0x6b   : > { %v531_v7 = vshrl.u32 %v7059_v43, 16  ;;  %v511_v41 = vrot.slane %v510_v46, 4  ;;  %v5397_v17 = vcombine.low %v2819_v55, %v2822_v2  ;;  %v520_v10 = vrot.slane %v518_v58, 4  ;;  %v7115_v46 = vld [vmem:[%s6747_s27 + $0xa0] sm:$0xf] }
  0x6c   : > { %5973 = vmatmul.mubr.msk.bf16.gmra.mrb[16].mxu1 %vm687_vm3, %v5112_v63  ;;  %v523_v11 = vrot.slane %v521_v54, 5  ;;  %v506_v14 = vsel %vm6773_vm4, %v501_v61, %v505_v48  ;;  %v529_v18 = vrot.slane %v527_v6, 5  ;;  %v537_v25 = vshll.u32 %v245_v52, 16  ;;  %v7104_v52 = vld [vmem:[%s6747_s27 + $0x9c] sm:$0xf] }
  0x6d   : > { %v533_v21 = vrot.slane %v531_v7, 4  ;;  %v516_v31 = vsel %vm6773_vm4, %v511_v41, %v515_v50  ;;  %6130 = vmatprep.mubr.msk.bf16.mxu0 %vm687_vm3, %v5397_v17  ;;  %v5381_v1 = vrot.slane %v5365_v57, 9  ;;  %v2825_v28 = vrot.slane %v6852_v33, 5 }
  0x6e   : > { %v524_v38 = vor.u32 %v523_v11, %v520_v10  ;;  %v5113_v42 = vcombine.low %v506_v14, %v516_v31  ;;  %v539_v45 = vrot.slane %v537_v25, 5  ;;  %v2828_v47 = vrot.slane %v6860_v40, 5  ;;  %v247_v10 = vld [vmem:[%s6747_s27 + $0xa4] sm:$0x1]  ;;  %v5367_v11 = vld [vmem:[%s6747_s27 + $0x48] sm:$0xe] }
  0x6f   : > { %v534_v44 = vor.u32 %v533_v21, %v529_v18  ;;  %v2826_v49 = vsel %vm6999_vm7, %v5381_v1, %v2825_v28  ;;  %v2827_v50 = vrot.slane %v2825_v28, 4  ;;  %v542_v51 = vshrl.u32 %v7083_v5, 16 }
  0x70   : > { %v525_v48 = vrot.slane %v524_v38, 4  ;;  %5976 = vmatprep.mubr.msk.bf16.mxu1 %vm687_vm3, %v5113_v42  ;;  %v545_v15 = vshll.u32 %v7083_v5, 16  ;;  %v551_v62 = vshll.u32 %v7095_v30, 16  ;;  %v555_v40 = vshrl.u32 %v7095_v30, 16 }
  0x71   : > { %v535_v33 = vrot.slane %v534_v44, 4  ;;  %v2829_v56 = vsel %vm6999_vm7, %v2827_v50, %v2828_v47  ;;  %v544_v57 = vrot.slane %v542_v51, 4  ;;  %v561_v63 = vshll.u32 %v246_v60, 16 }
  0x72   : > { %v530_v55 = vsel %vm6773_vm4, %v525_v48, %v529_v18  ;;  %v5398_v54 = vcombine.low %v2826_v49, %v2829_v56  ;;  %v547_v61 = vrot.slane %v545_v15, 5  ;;  %v553_v2 = vrot.slane %v551_v62, 5  ;;  %v7141_v56 = vld [vmem:[%s6747_s27 + $0xac] sm:$0xf] }
  0x73   : > { %v540_v58 = vsel %vm6773_vm4, %v535_v33, %v539_v45  ;;  %v557_v7 = vrot.slane %v555_v40, 4  ;;  %v563_v41 = vrot.slane %v561_v63, 5  ;;  %v5382_v17 = vrot.slane %v5366_v26, 9  ;;  %v7136_v33 = vld [vmem:[%s6747_s27 + $0xa8] sm:$0xf] }
  0x74   : > { %v5114_v6 = vcombine.low %v530_v55, %v540_v58  ;;  %6131 = vmatmul.mubr.msk.bf16.gmra.mrb[4].mxu0 %vm687_vm3, %v5398_v54  ;;  %v548_v14 = vor.u32 %v547_v61, %v544_v57  ;;  %v2832_v18 = vrot.slane %v6877_v20, 5  ;;  %v2835_v21 = vrot.slane %v6882_v34, 5  ;;  %v248_v61 = vld [vmem:[%s6747_s27 + $0xb0] sm:$0x1] }
  0x75   : > { %v566_v25 = vshrl.u32 %v7104_v52, 16  ;;  %v558_v31 = vor.u32 %v557_v7, %v553_v2  ;;  %v569_v38 = vshll.u32 %v7104_v52, 16  ;;  %v575_v1 = vshll.u32 %v7115_v46, 16 }
  0x76   : > { %5977 = vmatmul.mubr.msk.bf16.gmra.mrb[20].mxu1 %vm687_vm3, %v5114_v6  ;;  %v579_v28 = vshrl.u32 %v7115_v46, 16  ;;  %v549_v60 = vrot.slane %v548_v14, 4  ;;  %v2833_v42 = vsel %vm6999_vm7, %v5382_v17, %v2832_v18  ;;  %v2834_v20 = vrot.slane %v2832_v18, 4  ;;  %v7156_v14 = vld [vmem:[%s6747_s27 + $0xb4] sm:$0xf] }
  0x77   : > { %v568_v44 = vrot.slane %v566_v25, 4  ;;  %v559_v34 = vrot.slane %v558_v31, 4  ;;  %v571_v45 = vrot.slane %v569_v38, 5  ;;  %v577_v47 = vrot.slane %v575_v1, 5 }
  0x78   : > { %v581_v26 = vrot.slane %v579_v28, 4  ;;  %v554_v48 = vsel %vm6773_vm4, %v549_v60, %v553_v2  ;;  %v2836_v49 = vsel %vm6999_vm7, %v2834_v20, %v2835_v21  ;;  %v585_v50 = vshll.u32 %v247_v10, 16  ;;  %v5368_v2 = vld [vmem:[%s6747_s27 + $0x54] sm:$0xe] }
  0x79   : > { %v5383_v51 = vrot.slane %v5367_v11, 9  ;;  %v564_v15 = vsel %vm6773_vm4, %v559_v34, %v563_v41  ;;  %v5399_v62 = vcombine.low %v2833_v42, %v2836_v49  ;;  %v572_v40 = vor.u32 %v571_v45, %v568_v44  ;;  %v7165_v42 = vld [vmem:[%s6747_s27 + $0xb8] sm:$0xf]  ;;  %v249_v49 = vld [vmem:[%s6747_s27 + $0xbc] sm:$0x1] }
  0x7a   : > { %v582_v55 = vor.u32 %v581_v26, %v577_v47  ;;  %v5115_v57 = vcombine.low %v554_v48, %v564_v15  ;;  %v587_v63 = vrot.slane %v585_v50, 5  ;;  %v2839_v58 = vrot.slane %v6900_v8, 5 }
  0x7b   : > { %v2842_v54 = vrot.slane %v6908_v23, 5  ;;  %6134 = vmatprep.mubr.msk.bf16.mxu0 %vm687_vm3, %v5399_v62  ;;  %v573_v6 = vrot.slane %v572_v40, 4  ;;  %v590_v41 = vshrl.u32 %v7136_v33, 16  ;;  %v593_v17 = vshll.u32 %v7136_v33, 16 }
  0x7c   : > { %v583_v7 = vrot.slane %v582_v55, 4  ;;  %5980 = vmatprep.mubr.msk.bf16.mxu1 %vm687_vm3, %v5115_v57  ;;  %v2840_v10 = vsel %vm6999_vm7, %v5383_v51, %v2839_v58  ;;  %v2841_v11 = vrot.slane %v2839_v58, 4  ;;  %v599_v8 = vshll.u32 %v7141_v56, 16  ;;  %v5369_v55 = vld [vmem:[%s6747_s27 + $0x60] sm:$0xe] }
  0x7d   : > { %v603_v23 = vshrl.u32 %v7141_v56, 16  ;;  %v578_v18 = vsel %vm6773_vm4, %v573_v6, %v577_v47  ;;  %v592_v25 = vrot.slane %v590_v41, 4  ;;  %v595_v31 = vrot.slane %v593_v17, 5  ;;  %v5370_v6 = vld [vmem:[%s6747_s27 + $0x6c] sm:$0xe] }
  0x7e   : > { %v588_v21 = vsel %vm6773_vm4, %v583_v7, %v587_v63  ;;  %v2843_v1 = vsel %vm6999_vm7, %v2841_v11, %v2842_v54  ;;  %v601_v28 = vrot.slane %v599_v8, 5  ;;  %v609_v34 = vshll.u32 %v248_v61, 16  ;;  %v5306_v11 = vld [vmem:[%s6747_s27 + $0x70] sm:$0xf]  ;;  %v5307_v8 = vld [vmem:[%s6747_s27 + $0x74] sm:$0x1] }
  0x7f   : > { %v5116_v38 = vcombine.low %v578_v18, %v588_v21  ;;  %v605_v60 = vrot.slane %v603_v23, 4  ;;  %v5400_v20 = vcombine.low %v2840_v10, %v2843_v1  ;;  %v596_v44 = vor.u32 %v595_v31, %v592_v25 }
  0x80   : > { %v5384_v45 = vrot.slane %v5368_v2, 9  ;;  %v2846_v26 = vrot.slane %v6931_v4, 5  ;;  %v2849_v48 = vrot.slane %v6937_v12, 5  ;;  %v614_v50 = vshrl.u32 %v7156_v14, 16 }
  0x81   : > { %5981 = vmatmul.mubr.msk.bf16.gmra.mrb[24].mxu1 %vm687_vm3, %v5116_v38  ;;  %v606_v47 = vor.u32 %v605_v60, %v601_v28  ;;  %6135 = vmatmul.mubr.msk.bf16.gmra.mrb[8].mxu0 %vm687_vm3, %v5400_v20  ;;  %v597_v51 = vrot.slane %v596_v44, 4  ;;  %v611_v15 = vrot.slane %v609_v34, 5  ;;  %v617_v62 = vshll.u32 %v7156_v14, 16 }
  0x82   : > { %v623_v40 = vshll.u32 %v7165_v42, 16  ;;  %v2847_v4 = vsel %vm6999_vm7, %v5384_v45, %v2846_v26  ;;  %v2848_v12 = vrot.slane %v2846_v26, 4  ;;  %v616_v63 = vrot.slane %v614_v50, 4 }
  0x83   : > { %v607_v57 = vrot.slane %v606_v47, 4  ;;  %v602_v58 = vsel %vm6773_vm4, %v597_v51, %v601_v28  ;;  %v619_v54 = vrot.slane %v617_v62, 5  ;;  %v627_v2 = vshrl.u32 %v7165_v42, 16  ;;  %v5371_v47 = vld [vmem:[%s6747_s27 + $0x78] sm:$0xe] }
  0x84   : > { %v625_v61 = vrot.slane %v623_v40, 5  ;;  %v2850_v41 = vsel %vm6999_vm7, %v2848_v12, %v2849_v48  ;;  %v633_v17 = vshll.u32 %v249_v49, 16  ;;  %v5385_v10 = vrot.slane %v5369_v55, 9  ;;  %v6601_v51 = vld [vmem:[%s6747_s27] sm:$0xf] }
  0x85   : > { %v612_v7 = vsel %vm6773_vm4, %v607_v57, %v611_v15  ;;  %v5401_v18 = vcombine.low %v2847_v4, %v2850_v41  ;;  %v620_v21 = vor.u32 %v619_v54, %v616_v63  ;;  %v629_v25 = vrot.slane %v627_v2, 4  ;;  %v7203_v15 = vld [vmem:[%s6747_s27 + $0x4] sm:$0xf]  ;;  %v7207_v40 = vld [vmem:[%s6747_s27 + $0x7c] sm:$0xf] }
  0x86   : > { %v5117_v23 = vcombine.low %v602_v58, %v612_v7  ;;  %v635_v31 = vrot.slane %v633_v17, 5  ;;  %v2853_v38 = vrot.slane %v6961_v59, 5  ;;  %v2856_v1 = vrot.slane %v6968_v9, 5  ;;  %v7210_v55 = vld [vmem:[%s6747_s27 + $0x80] sm:$0x1] }
  0x87   : > { %v5386_v28 = vrot.slane %v5370_v6, 9  ;;  %6138 = vmatprep.mubr.msk.bf16.mxu0 %vm687_vm3, %v5401_v18  ;;  %v621_v60 = vrot.slane %v620_v21, 4  ;;  %v630_v20 = vor.u32 %v629_v25, %v625_v61  ;;  %v2860_v44 = vrot.slane %v5306_v11, 5  ;;  %v5312_v57 = vld [vmem:[%s6747_s27 + $0x88] sm:$0xf] }
  0x88   : > { %5984 = vmatprep.mubr.msk.bf16.mxu1 %vm687_vm3, %v5117_v23  ;;  %v2863_v34 = vrot.slane %v5307_v8, 5  ;;  %v2854_v45 = vsel %vm6999_vm7, %v5385_v10, %v2853_v38  ;;  %v2855_v59 = vrot.slane %v2853_v38, 4  ;;  %v5135_v62 = vcombine.low %v6601_v51, %v7203_v15  ;;  %v5313_v54 = vld [vmem:[%s6747_s27 + $0x8c] sm:$0x1]  ;;  %v5315_v17 = vld [vmem:[%s6747_s27 + $0x94] sm:$0xf] }
  0x89   : > { %v626_v9 = vsel %vm6773_vm4, %v621_v60, %v625_v61  ;;  %v631_v26 = vrot.slane %v630_v20, 4  ;;  %v2861_v48 = vsel %vm6999_vm7, %v5386_v28, %v2860_v44  ;;  %v2862_v49 = vrot.slane %v2860_v44, 4  ;;  %v5372_v61 = vld [vmem:[%s6747_s27 + $0x84] sm:$0xe]  ;;  %v5373_v23 = vld [vmem:[%s6747_s27 + $0x90] sm:$0xe] }
  0x8a   : > { %v2857_v50 = vsel %vm6999_vm7, %v2855_v59, %v2856_v1  ;;  %v5387_v58 = vrot.slane %v5371_v47, 9  ;;  %v2867_v7 = vrot.slane %v7207_v40, 5  ;;  %v2870_v41 = vrot.slane %v7210_v55, 5  ;;  %v5316_v25 = vld [vmem:[%s6747_s27 + $0x98] sm:$0x1] }
  0x8b   : > { %v636_v4 = vsel %vm6773_vm4, %v631_v26, %v635_v31  ;;  %v5402_v12 = vcombine.low %v2854_v45, %v2857_v50  ;;  %v2864_v63 = vsel %vm6999_vm7, %v2862_v49, %v2863_v34  ;;  %v5388_v10 = vrot.slane %v5372_v61, 9  ;;  %v5318_v31 = vld [vmem:[%s6747_s27 + $0xa0] sm:$0xf]  ;;  %v5319_v60 = vld [vmem:[%s6747_s27 + $0xa4] sm:$0x1] }
  0x8c   : > { %v5118_v2 = vcombine.low %v626_v9, %v636_v4  ;;  %v5403_v6 = vcombine.low %v2861_v48, %v2864_v63  ;;  %v2874_v11 = vrot.slane %v5312_v57, 5  ;;  %v2877_v8 = vrot.slane %v5313_v54, 5  ;;  %v5374_v20 = vld [vmem:[%s6747_s27 + $0x9c] sm:$0xe]  ;;  %v6603_v44 = vld [vmem:[%s6747_s27 + $0xc] sm:$0xf] }
  0x8d   : > { %6139 = vmatmul.mubr.msk.bf16.gmra.mrb[12].mxu0 %vm687_vm3, %v5402_v12  ;;  %v2868_v18 = vsel %vm6999_vm7, %v5387_v58, %v2867_v7  ;;  %v2869_v21 = vrot.slane %v2867_v7, 4  ;;  %v2881_v28 = vrot.slane %v5315_v17, 5  ;;  %v7237_v34 = vld [vmem:[%s6747_s27 + $0x10] sm:$0xf]  ;;  %v6605_v47 = vld [vmem:[%s6747_s27 + $0x18] sm:$0xf] }
  0x8e   : > { %5985 = vmatmul.mubr.msk.bf16.gmra.mrb[28].mxu1 %vm687_vm3, %v5118_v2  ;;  %6142 = vmatprep.mubr.msk.bf16.mxu0 %vm687_vm3, %v5403_v6  ;;  %v2875_v38 = vsel %vm6999_vm7, %v5388_v10, %v2874_v11  ;;  %v2876_v1 = vrot.slane %v2874_v11, 4  ;;  %v5136_v45 = vcombine.low %v6603_v44, %v7237_v34  ;;  %v7244_v9 = vld [vmem:[%s6747_s27 + $0x1c] sm:$0xf]  ;;  %v5389_v48 = vrot.slane %v5373_v23, 9  ;;  %v5321_v57 = vld [vmem:[%s6747_s27 + $0xac] sm:$0xf] }
  0x8f   : > { %5990 = vmatprep.mubr.msk.bf16.mxu1 %vm687_vm3, %v5135_v62  ;;  %v2871_v59 = vsel %vm6999_vm7, %v2869_v21, %v2870_v41  ;;  %v5137_v26 = vcombine.low %v6605_v47, %v7244_v9  ;;  %v2883_v51 = vrot.slane %v2881_v28, 4  ;;  %v2884_v62 = vrot.slane %v5316_v25, 5  ;;  %v6607_v54 = vld [vmem:[%s8504_s1 + $0x4] sm:$0x3]  ;;  %v5324_v2 = vld [vmem:[%s6747_s27 + $0xb8] sm:$0xf] }
  0x90   : > { %v5404_v49 = vcombine.low %v2868_v18, %v2871_v59  ;;  %v2878_v50 = vsel %vm6999_vm7, %v2876_v1, %v2877_v8  ;;  %v5390_v12 = vrot.slane %v5374_v20, 9  ;;  %v2888_v63 = vrot.slane %v5318_v31, 5  ;;  %v7259_v7 = vld [vmem:[%s8504_s1 + $0x6] sm:$0x3]  ;;  %v5322_v10 = vld [vmem:[%s6747_s27 + $0xb0] sm:$0x1] }
  0x91   : > { %v5405_v4 = vcombine.low %v2875_v38, %v2878_v50  ;;  %v2891_v58 = vrot.slane %v5319_v60, 5  ;;  %v1455_v61 = vsel %vm736_vm0, %v6607_v54, 0  ;;  %v2882_v41 = vsel %vm6999_vm7, %v5389_v48, %v2881_v28  ;;  %v5375_v11 = vld [vmem:[%s6747_s27 + $0xa8] sm:$0xe]  ;;  %v5325_v25 = vld [vmem:[%s6747_s27 + $0xbc] sm:$0x1] }
  0x92   : > { %v2890_v6 = vrot.slane %v2888_v63, 4  ;;  %v2885_v17 = vsel %vm6999_vm7, %v2883_v51, %v2884_v62  ;;  %v2895_v8 = vrot.slane %v5321_v57, 5  ;;  %v2889_v23 = vsel %vm6999_vm7, %v5390_v12, %v2888_v63  ;;  %v5376_v31 = vld [vmem:[%s6747_s27 + $0xb4] sm:$0xe]  ;;  %v6608_v38 = vld [vmem:[%s6747_s27 + $0x24] sm:$0xf] }
  0x93   : > { %v2902_v21 = vrot.slane %v5324_v2, 5  ;;  %v7280_v1 = vld [vmem:[%s6747_s27 + $0x28] sm:$0xf]  ;;  %v5406_v60 = vcombine.low %v2882_v41, %v2885_v17  ;;  %v5391_v44 = vrot.slane %v5375_v11, 9  ;;  %v2898_v59 = vrot.slane %v5322_v10, 5 }
  0x94   : > { %v2892_v18 = vsel %vm6999_vm7, %v2890_v6, %v2891_v58  ;;  %v5138_v28 = vcombine.low %v6608_v38, %v7280_v1  ;;  %v6610_v47 = vld [vmem:[%s6747_s27 + $0x30] sm:$0xf]  ;;  %v2905_v51 = vrot.slane %v5325_v25, 5  ;;  %v5327_v62 = vld [vmem:[%s6747_s27 + $0xc4] sm:$0xf]  ;;  %v2290_v25 = vshrl.u32 %v7207_v40, 16 }
  0x95   : > { %6143 = vmatmul.mubr.msk.bf16.gmra.mrb[16].mxu0 %vm687_vm3, %v5404_v49  ;;  %v5407_v20 = vcombine.low %v2889_v23, %v2892_v18  ;;  %v5392_v49 = vrot.slane %v5376_v31, 9  ;;  %v2904_v50 = vrot.slane %v2902_v21, 4  ;;  %v2896_v57 = vsel %vm6999_vm7, %v5391_v44, %v2895_v8  ;;  %v5377_v12 = vld [vmem:[%s6747_s27 + $0xc0] sm:$0xe]  ;;  %v6612_v41 = vld [vmem:[%s6747_s27 + $0x3c] sm:$0xf] }
  0x96   : > { %5991 = vmatmul.mubr.msk.bf16.vlgmr.msra.gmra.mrb[0].mxu1 %vm687_vm3, %v5136_v45  ;;  %6146 = vmatprep.mubr.msk.bf16.mxu0 %vm687_vm3, %v5405_v4  ;;  %v2897_v45 = vrot.slane %v2895_v8, 4  ;;  %v2909_v63 = vrot.slane %v5327_v62, 5  ;;  %v5393_v6 = vrot.slane %v5377_v12, 9  ;;  %v7305_v17 = vld [vmem:[%s6747_s27 + $0x40] sm:$0xf]  ;;  %v5141_v18 = vcombine.low %v6912_v27, %v6915_v36  ;;  %v6564_v62 = vld [vmem:[%s6747_s27 + $0x24] sm:$0xff]  }
  0x97   : > { %6023 = vmatpush3.bf16.msra.mxu1 %v1455_v61  ;;  %5994 = vmatprep.mubr.msk.bf16.mxu1 %vm687_vm3, %v5137_v26  ;;  %v7285_v26 = vld [vmem:[%s6747_s27 + $0x34] sm:$0xf]  ;;  %v2903_v58 = vsel %vm6999_vm7, %v5392_v49, %v2902_v21  ;;  %v2906_v54 = vsel %vm6999_vm7, %v2904_v50, %v2905_v51  ;;  %v5328_v61 = vld [vmem:[%s6747_s27 + $0xc8] sm:$0x1]  ;;  %v5140_v10 = vcombine.low %v6612_v41, %v7305_v17  ;;  %v2286_v21 = vshll.u32 %v7207_v40, 16 }
  0x98   : > { %6521 = vmatprep.subr.msk.bf16.mxu1 %vm736_vm0, %v7259_v7  ;;  %v5139_v48 = vcombine.low %v6610_v47, %v7285_v26  ;;  %v2899_v4 = vsel %vm6999_vm7, %v2897_v45, %v2898_v59  ;;  %v5409_v11 = vcombine.low %v2903_v58, %v2906_v54  ;;  %v2911_v8 = vrot.slane %v2909_v63, 4  ;;  %v1193_v45 = vld [vmem:[%s6747_s27] sm:$0xe]  ;;  %v1194_v59 = vld [vmem:[%s6747_s27 + $0xc] sm:$0xe] }
  0x99   : > { %v5408_v2 = vcombine.low %v2896_v57, %v2899_v4  ;;  %v2912_v23 = vrot.slane %v5328_v61, 5  ;;  %v2910_v31 = vsel %vm6999_vm7, %v5393_v6, %v2909_v63  ;;  %v7320_v27 = vrot.slane %v2286_v21, 5  ;;  %v1197_v41 = vld [vmem:[%s6747_s27 + $0x30] sm:$0xe] }
  0x9a   : > { %v2292_v36 = vrot.slane %v2290_v25, 4  ;;  %v5143_v44 = vcombine.low %v6972_v19, %v6978_v35  ;;  %v2296_v47 = vshll.u32 %v7210_v55, 16  ;;  %v5167_v19 = vrot.slane %v1193_v45, 9 }
  0x9b   : > { %v2913_v38 = vsel %vm6999_vm7, %v2911_v8, %v2912_v23  ;;  %8525 = vst [vmem:[#allocation3_spill] sm:$0xff] %v7320_v27  ;;  %v5168_v35 = vrot.slane %v1194_v59, 9  ;;  %v1260_v4 = vrot.slane %v7244_v9, 5  ;;  %v1267_v12 = vrot.slane %v7280_v1, 5  ;;  %v1198_v8 = vld [vmem:[%s6747_s27 + $0x3c] sm:$0xe] }
  0x9c   : > { %v5410_v40 = vcombine.low %v2910_v31, %v2913_v38  ;;  %v2293_v49 = vor.u32 %v2292_v36, %v7320_v27  ;;  %v7340_v51 = vrot.slane %v2296_v47, 5  ;;  %v5144_v58 = vcombine.low %v6993_v0, %v7006_v29  ;;  %v1199_v31 = vld [vmem:[%s6747_s27 + $0x48] sm:$0xe]  ;;  %v6618_v59 = vld [vmem:[%s6747_s27 + $0x38] sm:$0x1] }
  0x9d   : > { %6147 = vmatmul.mubr.msk.bf16.gmra.mrb[20].mxu0 %vm687_vm3, %v5406_v60  ;;  %v5142_v60 = vcombine.low %v6941_v24, %v6947_v37  ;;  %v6615_v24 = vld [vmem:[%s6747_s27 + $0x14] sm:$0x1]  ;;  %v4101_v54 = vsel %vm736_vm0, %v7064_v22, 0  ;;  %v5145_v61 = vcombine.low %v7025_v53, %v7032_v16  ;;  %v5146_v6 = vcombine.low %v7051_v39, %v7059_v43  ;;  %v6616_v16 = vld [vmem:[%s6747_s27 + $0x20] sm:$0x1] }
  0x9e   : > { %5995 = vmatmul.mubr.msk.bf16.gmra.mrb[4].mxu1 %vm687_vm3, %v5138_v28  ;;  %6150 = vmatprep.mubr.msk.bf16.mxu0 %vm687_vm3, %v5407_v20  ;;  %v1253_v28 = vrot.slane %v7237_v34, 5  ;;  %v6562_v20 = vld [vmem:[%s6747_s27 + $0x18] sm:$0xff]   ;;  %v6614_v34 = vld [vmem:[%s6747_s27 + $0x8] sm:$0x1]  ;;  %v1256_v37 = vrot.slane %v6615_v24, 5  ;;  %8526 = vst [vmem:[#allocation4_spill] sm:$0xff] %v7340_v51  ;;  %v5147_v9 = vcombine.low %v7083_v5, %v7095_v30 }
  0x9f   : > { %5998 = vmatprep.mubr.msk.bf16.mxu1 %vm687_vm3, %v5139_v48  ;;  %v1246_v48 = vrot.slane %v7203_v15, 5  ;;  %v1249_v50 = vrot.slane %v6614_v34, 5  ;;  %v1195_v15 = vld [vmem:[%s6747_s27 + $0x18] sm:$0xe]  ;;  %v7345_v63 = vrot.slane %v2293_v49, 4  ;;  %v1263_v22 = vrot.slane %v6616_v16, 5 }
  0xa0   : > { %v1255_v55 = vrot.slane %v1253_v28, 4  ;;  %v5169_v1 = vrot.slane %v1195_v15, 9  ;;  %v7367_v29 = vsel %vm6999_vm7, %v5168_v35, %v1253_v28  ;;  %v1269_v25 = vrot.slane %v1267_v12, 4  ;;  %v5492_v24 = vld [vmem:[%s6747_s27 + $0x18] sm:$0xf] }
  0xa1   : > { %v1248_v57 = vrot.slane %v1246_v48, 4  ;;  %8527 = vst [vmem:[#allocation5_spill] sm:$0xff] %v7345_v63  ;;  %v7363_v0 = vsel %vm6999_vm7, %v5167_v19, %v1246_v48  ;;  %v1277_v47 = vrot.slane %v6618_v59, 5  ;;  %v7404_v49 = vsel %vm736_vm0, %v7259_v7, 0  ;;  %v5493_v7 = vld [vmem:[%s6747_s27 + $0x1c] sm:$0xf] }
  0xa2   : > { %v7371_v53 = vsel %vm6999_vm7, %v1255_v55, %v1256_v37  ;;  %v7408_v34 = vsel %vm6999_vm7, %v5169_v1, %v1260_v4  ;;  %v6568_v37 = vld [vmem:[%s6747_s27 + $0x3c] sm:$0xff]   ;;  %v5172_v35 = vrot.slane %v1198_v8, 9  ;;  %v6619_v55 = vld [vmem:[%s6747_s27 + $0x44] sm:$0x1]  ;;  %v3622_v8 = vshll.u32 %v5492_v24, 16 }
  0xa3   : > { %v7382_v23 = vsel %vm6999_vm7, %v1248_v57, %v1249_v50  ;;  %v1200_v50 = vld [vmem:[%s6747_s27 + $0x54] sm:$0xe]  ;;  %v1284_v15 = vrot.slane %v6619_v55, 5  ;;  %v5496_v39 = vld [vmem:[%s6747_s27 + $0x28] sm:$0xf] }
  0xa4   : > { %v6626_v5 = vld [vmem:[%s6747_s27 + $0x70] sm:$0xf] }
  0xa5   : > { %6151 = vmatmul.mubr.msk.bf16.gmra.mrb[24].mxu0 %vm687_vm3, %v5408_v2  ;;  %v1196_v2 = vld [vmem:[%s6747_s27 + $0x24] sm:$0xe]  ;;  %v1309_v30 = vrot.slane %v6626_v5, 5 }
  0xa6   : > { %5999 = vmatmul.mubr.msk.bf16.gmra.mrb[8].mxu1 %vm687_vm3, %v5140_v10  ;;  %6154 = vmatprep.mubr.msk.bf16.mxu0 %vm687_vm3, %v5409_v11  ;;  %v1274_v10 = vrot.slane %v7285_v26, 5  ;;  %v6566_v11 = vld [vmem:[%s6747_s27 + $0x30] sm:$0xff]   ;;  %v5170_v21 = vrot.slane %v1196_v2, 9 }
  0xa7   : > { %6002 = vmatprep.mubr.msk.bf16.mxu1 %vm687_vm3, %v5141_v18  ;;  %v7378_v26 = vld [vmem:[%s8504_s1 + $0x10] sm:$0x3]  ;;  %v1262_v18 = vrot.slane %v1260_v4, 4  ;;  %v1311_v48 = vrot.slane %v1309_v30, 4 }
  0xa8   : > { %v1276_v45 = vrot.slane %v1274_v10, 4  ;;  %v7415_v19 = vsel %vm6999_vm7, %v5170_v21, %v1267_v12  ;;  %v3632_v21 = vshrl.u32 %v5493_v7, 16 }
  0xa9   : > { %v7424_v4 = vsel %vm6999_vm7, %v1262_v18, %v1263_v22  ;;  %v3619_v22 = vshrl.u32 %v5492_v24, 16  ;;  %v3628_v18 = vshll.u32 %v5493_v7, 16  ;;  %v5495_v24 = vld [vmem:[%s6747_s27 + $0x24] sm:$0xf] }
  0xaa   : > { %v7437_v1 = vsel %vm6999_vm7, %v1276_v45, %v1277_v47 }
  0xab   : > { %v3621_v43 = vrot.slane %v3619_v22, 4  ;;  %v7479_v7 = vrot.slane %v3628_v18, 5  ;;  %v3646_v22 = vshll.u32 %v5495_v24, 16  ;;  %v3656_v18 = vshrl.u32 %v5496_v39, 16 }
  0xad   : > { %6155 = vmatmul.mubr.msk.bf16.gmra.mrb[28].mxu0 %vm687_vm3, %v5410_v40  ;;  %v6617_v40 = vld [vmem:[%s6747_s27 + $0x2c] sm:$0x1]  ;;  %v3648_v27 = vrot.slane %v3646_v22, 5 }
  0xae   : > { %6003 = vmatmul.mubr.msk.bf16.gmra.mrb[12].mxu1 %vm687_vm3, %v5142_v60  ;;  %6160 = vmatprep.mubr.msk.bf16.mxu0 %vm687_vm3, %v6562_v20  ;;  %v1270_v28 = vrot.slane %v6617_v40, 5  ;;  %v1281_v60 = vrot.slane %v7305_v17, 5  ;;  %v6622_v40 = vld [vmem:[%s6747_s27 + $0x50] sm:$0x1]  ;;  %v6627_v17 = vld [vmem:[%s6747_s27 + $0x74] sm:$0x1] }
  0xaf   : > { %6006 = vmatprep.mubr.msk.bf16.mxu1 %vm687_vm3, %v5143_v44  ;;  %v5171_v44 = vrot.slane %v1197_v41, 9  ;;  %v5174_v41 = vrot.slane %v1200_v50, 9  ;;  %v1201_v50 = vld [vmem:[%s6747_s27 + $0x60] sm:$0xe]  ;;  %v5497_v20 = vld [vmem:[%s6747_s27 + $0x2c] sm:$0x1] }
  0xb0   : > { %v1283_v12 = vrot.slane %v1281_v60, 4  ;;  %v7450_v45 = vsel %vm6999_vm7, %v5172_v35, %v1281_v60  ;;  %v6623_v35 = vld [vmem:[%s6747_s27 + $0x5c] sm:$0x1] }
  0xb1   : > { %v7433_v2 = vsel %vm6999_vm7, %v5171_v44, %v1274_v10  ;;  %v1298_v55 = vrot.slane %v6623_v35, 5  ;;  %v1202_v35 = vld [vmem:[%s6747_s27 + $0x6c] sm:$0xe] }
  0xb2   : > { %v7454_v59 = vsel %vm6999_vm7, %v1283_v12, %v1284_v15  ;;  %v6624_v15 = vld [vmem:[%s6747_s27 + $0x64] sm:$0xf]  ;;  %v3634_v12 = vrot.slane %v3632_v21, 4  ;;  %v5176_v5 = vrot.slane %v1202_v35, 9 }
  0xb3   : > { %v6574_v21 = vld [vmem:[%s6747_s27 + $0x60] sm:$0xff]  }
  0xb5   : > { %6161 = vmatmul.mubr.msk.bf16.vlgmr.msra.gmra.mrb[0].mxu0 %vm687_vm3, %v6564_v62  ;;  %v6620_v62 = vld [vmem:[%s6747_s27 + $0x4c] sm:$0xf] }
  0xb6   : > { %6007 = vmatmul.mubr.msk.bf16.gmra.mrb[16].mxu1 %vm687_vm3, %v5144_v58  ;;  %6193 = vmatpush3.bf16.msra.mxu0 %v4101_v54  ;;  %v1288_v57 = vrot.slane %v6620_v62, 5  ;;  %v7428_v58 = vsel %vm6999_vm7, %v1269_v25, %v1270_v28  ;;  %v5173_v54 = vrot.slane %v1199_v31, 9  ;;  %v1291_v28 = vrot.slane %v6622_v40, 5 }
  0xb7   : > { %6010 = vmatprep.mubr.msk.bf16.mxu1 %vm687_vm3, %v5145_v61  ;;  %6164 = vmatprep.mubr.msk.bf16.mxu0 %vm687_vm3, %v6566_v11  ;;  %v6570_v61 = vld [vmem:[%s6747_s27 + $0x48] sm:$0xff]   ;;  %v6621_v11 = vld [vmem:[%s6747_s27 + $0x58] sm:$0xf]  ;;  %v1302_v62 = vrot.slane %v6624_v15, 5  ;;  %v5499_v15 = vld [vmem:[%s6747_s27 + $0x34] sm:$0xf] }
  0xb8   : > { %6527 = vmatprep.subr.msk.bf16.mxu0 %vm736_vm0, %v7378_v26  ;;  %v1295_v16 = vrot.slane %v6621_v11, 5  ;;  %v1290_v31 = vrot.slane %v1288_v57, 4  ;;  %v7458_v47 = vsel %vm6999_vm7, %v5173_v54, %v1288_v57  ;;  %v5494_v57 = vld [vmem:[%s6747_s27 + $0x20] sm:$0x1]  ;;  %v5498_v54 = vld [vmem:[%s6747_s27 + $0x30] sm:$0xf] }
  0xb9   : > { %v5175_v11 = vrot.slane %v1201_v50, 9  ;;  %v3670_v50 = vshll.u32 %v5498_v54, 16  ;;  %v3638_v25 = vshll.u32 %v5494_v57, 16  ;;  %v3676_v36 = vshll.u32 %v5499_v15, 16 }
  0xba   : > { %v7469_v60 = vsel %vm6999_vm7, %v5174_v41, %v1295_v16  ;;  %v7485_v41 = vsel %vm6999_vm7, %v1290_v31, %v1291_v28  ;;  %v1304_v31 = vrot.slane %v1302_v62, 4  ;;  %v3667_v28 = vshrl.u32 %v5498_v54, 16 }
  0xbb   : > { %v7527_v35 = vrot.slane %v3676_v36, 5 }
  0xbd   : > { %6165 = vmatmul.mubr.msk.bf16.gmra.mrb[4].mxu0 %vm687_vm3, %v6568_v37  ;;  %v1297_v37 = vrot.slane %v1295_v16, 4  ;;  %v6625_v16 = vld [vmem:[%s6747_s27 + $0x68] sm:$0x1] }
  0xbe   : > { %6011 = vmatmul.mubr.msk.bf16.gmra.mrb[20].mxu1 %vm687_vm3, %v5146_v6  ;;  %6168 = vmatprep.mubr.msk.bf16.mxu0 %vm687_vm3, %v6570_v61  ;;  %v3624_v6 = vrot.slane %v3622_v8, 5  ;;  %v6572_v61 = vld [vmem:[%s6747_s27 + $0x54] sm:$0xff]   ;;  %v1305_v40 = vrot.slane %v6625_v16, 5  ;;  %v3652_v8 = vshll.u32 %v5496_v39, 16  ;;  %v3635_v16 = vor.u32 %v3634_v12, %v7479_v7 }
  0xbf   : > { %6014 = vmatprep.mubr.msk.bf16.mxu1 %vm687_vm3, %v5147_v9  ;;  %v3643_v9 = vshrl.u32 %v5495_v24, 16  ;;  %v7494_v44 = vsel %vm6999_vm7, %v1297_v37, %v1298_v55  ;;  %v1312_v24 = vrot.slane %v6627_v17, 5  ;;  %v3680_v39 = vshrl.u32 %v5499_v15, 16 }
  0xc0   : > { %v3625_v10 = vor.u32 %v3624_v6, %v3621_v43  ;;  %v7500_v37 = vrot.slane %v3652_v8, 5  ;;  %v3658_v55 = vrot.slane %v3656_v18, 4  ;;  %v8528_v43 = vcombine.low %v7104_v52, %v7115_v46  ;;  %v6628_v8 = vld [vmem:[%s6747_s27 + $0x7c] sm:$0xf]  ;;  %v7536_v18 = vld [vmem:[%s6747_s27 + $0x38] sm:$0x1] }
  0xc1   : > { %v3645_v38 = vrot.slane %v3643_v9, 4  ;;  %v7509_v17 = vsel %vm6999_vm7, %v5175_v11, %v1302_v62  ;;  %v7513_v57 = vsel %vm6999_vm7, %v1304_v31, %v1305_v40  ;;  %v3669_v6 = vrot.slane %v3667_v28, 4  ;;  %8530 = vst [vmem:[#allocation6_spill] sm:$0xff] %v7536_v18 }
  0xc2   : > { %v3672_v12 = vrot.slane %v3670_v50, 5  ;;  %v8529_v52 = vcombine.low %v7136_v33, %v7141_v56  ;;  %v3626_v46 = vrot.slane %v3625_v10, 4  ;;  %v3636_v54 = vrot.slane %v3635_v16, 4  ;;  %v6576_v33 = vld [vmem:[%s6747_s27 + $0x6c] sm:$0xff]   ;;  %v1204_v16 = vld [vmem:[%s6747_s27 + $0x84] sm:$0xe] }
  0xc3   : > { %v3662_v62 = vshll.u32 %v5497_v20, 16  ;;  %v7521_v11 = vsel %vm6999_vm7, %v5176_v5, %v1309_v30  ;;  %v7525_v40 = vsel %vm6999_vm7, %v1311_v48, %v1312_v24  ;;  %v3682_v9 = vrot.slane %v3680_v39, 4  ;;  %v6577_v48 = vld [vmem:[%s6747_s27 + $0x78] sm:$0xff]  }
  0xc4   : > { %v3649_v10 = vor.u32 %v3648_v27, %v3645_v38  ;;  %v3659_v20 = vor.u32 %v3658_v55, %v7500_v37  ;;  %v1316_v30 = vrot.slane %v6628_v8, 5  ;;  %v3673_v38 = vor.u32 %v3672_v12, %v3669_v6  ;;  %v5501_v5 = vld [vmem:[%s6747_s27 + $0x3c] sm:$0xf] }
  0xc5   : > { %6169 = vmatmul.mubr.msk.bf16.gmra.mrb[8].mxu0 %vm687_vm3, %v6572_v61  ;;  %v3640_v61 = vrot.slane %v3638_v25, 5  ;;  %v1203_v25 = vld [vmem:[%s6747_s27 + $0x78] sm:$0xe]  ;;  %v7552_v50 = vrot.slane %v3662_v62, 5  ;;  %v3683_v39 = vor.u32 %v3682_v9, %v7527_v35  ;;  %v3686_v55 = vshll.u32 %v7536_v18, 16 }
  0xc6   : > { %6015 = vmatmul.mubr.msk.bf16.gmra.mrb[24].mxu1 %vm687_vm3, %v8528_v43  ;;  %6172 = vmatprep.mubr.msk.bf16.mxu0 %vm687_vm3, %v6574_v21  ;;  %v3631_v21 = vsel %vm6773_vm4, %v3626_v46, %v7479_v7  ;;  %v5177_v24 = vrot.slane %v1203_v25, 9  ;;  %v6629_v43 = vld [vmem:[%s6747_s27 + $0x88] sm:$0xf]  ;;  %v7560_v7 = vld [vmem:[%s6747_s27 + $0x40] sm:$0xf]  ;;  %v3650_v12 = vrot.slane %v3649_v10, 4  ;;  %v8532_v62 = vcombine.low %v7156_v14, %v7165_v42 }
  0xc7   : > { %6018 = vmatprep.mubr.msk.bf16.mxu1 %vm687_vm3, %v8529_v52  ;;  %v3641_v31 = vsel %vm6773_vm4, %v3636_v54, %v3640_v61  ;;  %v1323_v6 = vrot.slane %v6629_v43, 5  ;;  %8531 = vst [vmem:[#allocation7_spill] sm:$0xff] %v7560_v7  ;;  %v3660_v52 = vrot.slane %v3659_v20, 4  ;;  %v1318_v46 = vrot.slane %v1316_v30, 4  ;;  %v6630_v54 = vld [vmem:[%s6747_s27 + $0x80] sm:$0x1] }
  0xc8   : > { %v1319_v61 = vrot.slane %v6630_v54, 5  ;;  %v3674_v9 = vrot.slane %v3673_v38, 4  ;;  %v5178_v25 = vrot.slane %v1204_v16, 9  ;;  %v3691_v8 = vshrl.u32 %v5501_v5, 16  ;;  %v6578_v10 = vld [vmem:[%s6747_s27 + $0x84] sm:$0xff]  }
  0xc9   : > { %v3694_v43 = vshll.u32 %v5501_v5, 16  ;;  %v7574_v20 = vcombine.low %v3631_v21, %v3641_v31  ;;  %v7578_v14 = vsel %vm736_vm0, %v7378_v26, 0  ;;  %v3704_v38 = vshrl.u32 %v7560_v7, 16  ;;  %v6579_v21 = vld [vmem:[%s6747_s27 + $0x90] sm:$0xff]   ;;  %v6635_v18 = vld [vmem:[%s6747_s27 + $0xa0] sm:$0xf] }
  0xca   : > { %v3684_v16 = vrot.slane %v3683_v39, 4  ;;  %v3688_v5 = vrot.slane %v3686_v55, 5  ;;  %v1325_v54 = vrot.slane %v1323_v6, 4  ;;  %v3655_v31 = vsel %vm6773_vm4, %v3650_v12, %v7500_v37 }
  0xcb   : > { %v3665_v26 = vsel %vm6773_vm4, %v3660_v52, %v7552_v50  ;;  %v7593_v39 = vsel %vm6999_vm7, %v5177_v24, %v1316_v30  ;;  %v7597_v55 = vsel %vm6999_vm7, %v1318_v46, %v1319_v61  ;;  %v3679_v37 = vsel %vm6773_vm4, %v3674_v9, %v7527_v35  ;;  %v5507_v30 = vld [vmem:[%s6747_s27 + $0x54] sm:$0xf]  ;;  %v7614_v24 = vld [vmem:[%s6747_s27 + $0x58] sm:$0xf]  ;;  %v7619_v61 = vld [vmem:[%s6747_s27 + $0x90] sm:$0xe] }
  0xcc   : > { %v7610_v12 = vsel %vm6999_vm7, %v5178_v25, %v1323_v6  ;;  %v3693_v50 = vrot.slane %v3691_v8, 4  ;;  %v3696_v52 = vrot.slane %v3694_v43, 5  ;;  %v3706_v46 = vrot.slane %v3704_v38, 4 }
  0xcd   : > { %6173 = vmatmul.mubr.msk.bf16.gmra.mrb[12].mxu0 %vm687_vm3, %v6576_v33  ;;  %v8533_v33 = vcombine.low %v7363_v0, %v7382_v23  ;;  %v6631_v0 = vld [vmem:[%s6747_s27 + $0x8c] sm:$0x1]  ;;  %v3689_v36 = vsel %vm6773_vm4, %v3684_v16, %v3688_v5  ;;  %v3739_v25 = vshrl.u32 %v5507_v30, 16  ;;  %v3742_v8 = vshll.u32 %v5507_v30, 16 }
  0xce   : > { %6019 = vmatmul.mubr.msk.bf16.gmra.mrb[28].mxu1 %vm687_vm3, %v8532_v62  ;;  %6176 = vmatprep.mubr.msk.bf16.mxu0 %vm687_vm3, %v6577_v48  ;;  %v3700_v48 = vshll.u32 %v7560_v7, 16  ;;  %v1326_v23 = vrot.slane %v6631_v0, 5  ;;  %v5504_v62 = vld [vmem:[%s6747_s27 + $0x48] sm:$0xf]  ;;  %v7603_v0 = vld [vmem:[%s6747_s27 + $0x4c] sm:$0xf]  ;;  %v8535_v38 = vcombine.low %v7367_v29, %v7371_v53  ;;  %v7637_v16 = vcombine.low %v3655_v31, %v3665_v26 }
  0xcf   : > { %6024 = vmatprep.mubr.msk.bf16.mxu1 %vm687_vm3, %v8533_v33  ;;  %v7600_v33 = vld [vmem:[%s6747_s27 + $0x44] sm:$0x1]  ;;  %v3715_v27 = vshrl.u32 %v5504_v62, 16  ;;  %v3718_v15 = vshll.u32 %v5504_v62, 16  ;;  %v3724_v6 = vshll.u32 %v7603_v0, 16  ;;  %v3728_v9 = vshrl.u32 %v7603_v0, 16 }
  0xd0   : > { %8534 = vst [vmem:[#allocation8_spill] sm:$0xff] %v7600_v33  ;;  %v7616_v28 = vrot.slane %v3700_v48, 5  ;;  %v7625_v35 = vsel %vm6999_vm7, %v1325_v54, %v1326_v23  ;;  %v3748_v43 = vshll.u32 %v7614_v24, 16  ;;  %v3752_v48 = vshrl.u32 %v7614_v24, 16  ;;  %v5510_v31 = vld [vmem:[%s6747_s27 + $0x60] sm:$0xf] }
  0xd1   : > { %v3710_v5 = vshll.u32 %v7600_v33, 16  ;;  %v5179_v54 = vrot.slane %v7619_v61, 9  ;;  %v8536_v23 = vcombine.low %v7408_v34, %v7424_v4  ;;  %v7648_v29 = vcombine.low %v3679_v37, %v3689_v36  ;;  %v6580_v26 = vld [vmem:[%s6747_s27 + $0x9c] sm:$0xff]   ;;  %v6581_v30 = vld [vmem:[%s6747_s27 + $0xa8] sm:$0xff]  }
  0xd2   : > { %v3697_v53 = vor.u32 %v3696_v52, %v3693_v50  ;;  %v3717_v62 = vrot.slane %v3715_v27, 4  ;;  %v7659_v34 = vrot.slane %v3724_v6, 5  ;;  %v3730_v4 = vrot.slane %v3728_v9, 4  ;;  %v6632_v36 = vld [vmem:[%s8504_s1 + $0x8] sm:$0x3] }
  0xd3   : > { %v3741_v27 = vrot.slane %v3739_v25, 4  ;;  %v3744_v37 = vrot.slane %v3742_v8, 5  ;;  %v7668_v50 = vrot.slane %v3748_v43, 5  ;;  %v3754_v52 = vrot.slane %v3752_v48, 4  ;;  %v6633_v6 = vld [vmem:[%s6747_s27 + $0x94] sm:$0xf] }
  0xd4   : > { %v7674_v9 = vld [vmem:[%s6747_s27 + $0x64] sm:$0xf]  ;;  %v3763_v61 = vshrl.u32 %v5510_v31, 16  ;;  %v7676_v22 = vrot.slane %v3697_v53, 4  ;;  %v1337_v25 = vrot.slane %v6635_v18, 5  ;;  %v3731_v43 = vor.u32 %v3730_v4, %v7659_v34 }
  0xd5   : > { %6177 = vmatmul.mubr.msk.bf16.gmra.mrb[16].mxu0 %vm687_vm3, %v6578_v10  ;;  %8537 = vst [vmem:[#allocation9_spill] sm:$0xff] %v7674_v9  ;;  %v3766_v10 = vshll.u32 %v5510_v31, 16  ;;  %v3745_v31 = vor.u32 %v3744_v37, %v3741_v27  ;;  %v3755_v53 = vor.u32 %v3754_v52, %v7668_v50  ;;  %v8538_v18 = vcombine.low %v7415_v19, %v7428_v58  ;;  %v6582_v37 = vld [vmem:[%s6747_s27 + $0xb4] sm:$0xff]  }
  0xd6   : > { %6025 = vmatmul.mubr.msk.bf16.vlgmr.msra.gmra.mrb[0].mxu1 %vm687_vm3, %v8535_v38  ;;  %6180 = vmatprep.mubr.msk.bf16.mxu0 %vm687_vm3, %v6579_v21  ;;  %v3720_v21 = vrot.slane %v3718_v15, 5  ;;  %v7657_v38 = vld [vmem:[%s6747_s27 + $0x50] sm:$0x1]  ;;  %v7666_v15 = vld [vmem:[%s6747_s27 + $0x5c] sm:$0x1]  ;;  %v8539_v27 = vcombine.low %v7433_v2, %v7437_v1  ;;  %v1339_v52 = vrot.slane %v1337_v25, 4 }
  0xd7   : > { %6057 = vmatpush3.bf16.msra.mxu1 %v7404_v49  ;;  %6028 = vmatprep.mubr.msk.bf16.mxu1 %vm687_vm3, %v8536_v23  ;;  %v3707_v49 = vor.u32 %v3706_v46, %v7616_v28  ;;  %v7670_v46 = vrot.slane %v3710_v5, 5  ;;  %v1330_v23 = vrot.slane %v6633_v6, 5  ;;  %v3734_v48 = vshll.u32 %v7657_v38, 16  ;;  %v1206_v5 = vld [vmem:[%s6747_s27 + $0x9c] sm:$0xe] }
  0xd8   : > { %6523 = vmatprep.subr.msk.bf16.mxu1 %vm736_vm0, %v6632_v36  ;;  %v6634_v36 = vld [vmem:[%s6747_s27 + $0x98] sm:$0x1]  ;;  %v3721_v7 = vor.u32 %v3720_v21, %v3717_v62  ;;  %v3758_v6 = vshll.u32 %v7666_v15, 16  ;;  %v3776_v62 = vshrl.u32 %v7674_v9, 16  ;;  %v3768_v4 = vrot.slane %v3766_v10, 5 }
  0xd9   : > { %v1333_v33 = vrot.slane %v6634_v36, 5  ;;  %v3708_v8 = vrot.slane %v3707_v49, 4  ;;  %v3772_v36 = vshll.u32 %v7674_v9, 16  ;;  %v7695_v21 = vsel %vm6999_vm7, %v5179_v54, %v1330_v23  ;;  %v7706_v2 = vld [vmem:[%s6747_s27 + $0x68] sm:$0x1] }
  0xda   : > { %v3765_v49 = vrot.slane %v3763_v61, 4  ;;  %v3722_v19 = vrot.slane %v3721_v7, 4  ;;  %v5180_v58 = vrot.slane %v1206_v5, 9  ;;  %v3732_v3 = vrot.slane %v3731_v43, 4  ;;  %8540 = vst [vmem:[#allocation10_spill] sm:$0xff] %v7706_v2  ;;  %v6583_v5 = vld [vmem:[%s6747_s27 + $0xc0] sm:$0xff]  }
  0xdb   : > { %v3736_v54 = vrot.slane %v3734_v48, 5  ;;  %v3760_v63 = vrot.slane %v3758_v6, 5  ;;  %v1344_v61 = vrot.slane %v7141_v56, 5  ;;  %v3746_v10 = vrot.slane %v3745_v31, 4  ;;  %v1208_v31 = vld [vmem:[%s6747_s27 + $0xb4] sm:$0xe] }
  0xdc   : > { %v3756_v51 = vrot.slane %v3755_v53, 4  ;;  %v7708_v1 = vrot.slane %v3772_v36, 5  ;;  %v3778_v7 = vrot.slane %v3776_v62, 4  ;;  %v3703_v43 = vsel %vm6773_vm4, %v7676_v22, %v7616_v28  ;;  %v6637_v62 = vld [vmem:[%s6747_s27 + $0xb0] sm:$0x1] }
  0xdd   : > { %6181 = vmatmul.mubr.msk.bf16.gmra.mrb[20].mxu0 %vm687_vm3, %v6580_v26  ;;  %v1332_v26 = vrot.slane %v1330_v23, 4  ;;  %v1207_v23 = vld [vmem:[%s6747_s27 + $0xa8] sm:$0xe]  ;;  %v3713_v48 = vsel %vm6773_vm4, %v3708_v8, %v7670_v46  ;;  %v3769_v6 = vor.u32 %v3768_v4, %v3765_v49  ;;  %v3727_v53 = vsel %vm6773_vm4, %v3722_v19, %v7659_v34  ;;  %v5513_v46 = vld [vmem:[%s6747_s27 + $0x6c] sm:$0xf] }
  0xde   : > { %6029 = vmatmul.mubr.msk.bf16.gmra.mrb[4].mxu1 %vm687_vm3, %v8538_v18  ;;  %6184 = vmatprep.mubr.msk.bf16.mxu0 %vm687_vm3, %v6581_v30  ;;  %v6636_v18 = vld [vmem:[%s6747_s27 + $0xa4] sm:$0x1]  ;;  %v7728_v36 = vsel %vm6999_vm7, %v5180_v58, %v1337_v25  ;;  %v5181_v28 = vrot.slane %v1207_v23, 9  ;;  %v1346_v8 = vrot.slane %v1344_v61, 4  ;;  %v3782_v49 = vshll.u32 %v7706_v2, 16 }
  0xdf   : > { %6032 = vmatprep.mubr.msk.bf16.mxu1 %vm687_vm3, %v8539_v27  ;;  %v1340_v30 = vrot.slane %v6636_v18, 5  ;;  %v7720_v56 = vsel %vm6999_vm7, %v1332_v26, %v1333_v33  ;;  %v3737_v33 = vsel %vm6773_vm4, %v3732_v3, %v3736_v54  ;;  %v1347_v26 = vrot.slane %v6637_v62, 5  ;;  %v5516_v18 = vld [vmem:[%s6747_s27 + $0x78] sm:$0xf]  ;;  %v7783_v54 = vld [vmem:[%s6747_s27 + $0xbc] sm:$0x1] }
  0xe0   : > { %v3751_v34 = vsel %vm6773_vm4, %v3746_v10, %v7668_v50  ;;  %v3761_v25 = vsel %vm6773_vm4, %v3756_v51, %v3760_v63  ;;  %v3779_v4 = vor.u32 %v3778_v7, %v7708_v1  ;;  %v5182_v27 = vrot.slane %v1208_v31, 9  ;;  %v7757_v51 = vld [vmem:[%s6747_s27 + $0x70] sm:$0xf]  ;;  %v7787_v10 = vld [vmem:[%s6747_s27 + $0x7c] sm:$0xf] }
  0xe1   : > { %v7732_v22 = vsel %vm6999_vm7, %v1339_v52, %v1340_v30  ;;  %v8542_v3 = vcombine.low %v7450_v45, %v7454_v59  ;;  %v7753_v19 = vrot.slane %v3769_v6, 4  ;;  %v1351_v50 = vrot.slane %v7165_v42, 5  ;;  %8543 = vst [vmem:[#allocation12_spill] sm:$0xff] %v7757_v51  ;;  %8545 = vst [vmem:[#allocation13_spill] sm:$0xff] %v7787_v10  ;;  %v5519_v7 = vld [vmem:[%s6747_s27 + $0x84] sm:$0xf] }
  0xe2   : > { %8541 = vst [vmem:[#allocation11_spill] sm:$0xff] %v7732_v22  ;;  %v3787_v63 = vshrl.u32 %v5513_v46, 16  ;;  %v8544_v45 = vcombine.low %v7458_v47, %v7485_v41  ;;  %v7765_v58 = vcombine.low %v3727_v53, %v3737_v33  ;;  %v7771_v42 = vsel %vm6999_vm7, %v5181_v28, %v1344_v61  ;;  %v6584_v61 = vld [vmem:[%s6747_s27 + $0xcc] sm:$0xff]   ;;  %v7799_v31 = vld [vmem:[%s6747_s27 + $0x88] sm:$0xf] }
  0xe3   : > { %v7774_v30 = vcombine.low %v3751_v34, %v3761_v25  ;;  %v7778_v47 = vsel %vm6999_vm7, %v1346_v8, %v1347_v26  ;;  %v7780_v41 = vrot.slane %v3782_v49, 5  ;;  %v3796_v6 = vshll.u32 %v7757_v51, 16  ;;  %8546 = vst [vmem:[#allocation14_spill] sm:$0xff] %v7799_v31  ;;  %v5522_v62 = vld [vmem:[%s6747_s27 + $0x90] sm:$0xf] }
  0xe4   : > { %v7805_v28 = vrot.slane %v1351_v50, 4  ;;  %v7807_v33 = vrot.slane %v3787_v63, 4  ;;  %v3800_v8 = vshrl.u32 %v7757_v51, 16  ;;  %v3811_v26 = vshrl.u32 %v5516_v18, 16  ;;  %v7814_v25 = vld [vmem:[%s6747_s27 + $0x94] sm:$0xf] }
  0xe5   : > { %6185 = vmatmul.mubr.msk.bf16.gmra.mrb[24].mxu0 %vm687_vm3, %v6582_v37  ;;  %v7751_v37 = vcombine.low %v3703_v43, %v3713_v48  ;;  %v7795_v43 = vsel %vm6999_vm7, %v5182_v27, %v1351_v50  ;;  %v3790_v48 = vshll.u32 %v5513_v46, 16  ;;  %v3814_v49 = vshll.u32 %v5516_v18, 16  ;;  %8547 = vst [vmem:[#allocation15_spill] sm:$0xff] %v7814_v25  ;;  %v7852_v2 = vld [vmem:[%s6747_s27 + $0x8c] sm:$0x1] }
  0xe6   : > { %6033 = vmatmul.mubr.msk.bf16.gmra.mrb[8].mxu1 %vm687_vm3, %v8542_v3  ;;  %6188 = vmatprep.mubr.msk.bf16.mxu0 %vm687_vm3, %v6583_v5  ;;  %v7791_v5 = vrot.slane %v3779_v4, 4  ;;  %v3820_v46 = vshll.u32 %v7787_v10, 16  ;;  %v3824_v34 = vshrl.u32 %v7787_v10, 16  ;;  %v3835_v4 = vshrl.u32 %v5519_v7, 16 }
  0xe7   : > { %6036 = vmatprep.mubr.msk.bf16.mxu1 %vm687_vm3, %v8544_v45  ;;  %v3838_v27 = vshll.u32 %v5519_v7, 16  ;;  %v3844_v3 = vshll.u32 %v7799_v31, 16  ;;  %v3848_v50 = vshrl.u32 %v7799_v31, 16  ;;  %v7824_v45 = vld [vmem:[%s6747_s27 + $0x74] sm:$0x1]  ;;  %v3792_v18 = vrot.slane %v3790_v48, 5 }
  0xe8   : > { %v3859_v52 = vshrl.u32 %v5522_v62, 16  ;;  %v3862_v53 = vshll.u32 %v5522_v62, 16  ;;  %v8548_v7 = vcombine.low %v7469_v60, %v7494_v44  ;;  %v3802_v59 = vrot.slane %v3800_v8, 4  ;;  %v5525_v48 = vld [vmem:[%s6747_s27 + $0x9c] sm:$0xf] }
  0xe9   : > { %v3868_v63 = vshll.u32 %v7814_v25, 16  ;;  %v3872_v23 = vshrl.u32 %v7814_v25, 16  ;;  %v8549_v62 = vcombine.low %v7509_v17, %v7513_v57  ;;  %v7842_v44 = vld [vmem:[%s6747_s27 + $0x80] sm:$0x1]  ;;  %v3813_v60 = vrot.slane %v3811_v26, 4 }
  0xea   : > { %8550 = vst [vmem:[#allocation16_spill] sm:$0xff] %v7842_v44  ;;  %v3837_v31 = vrot.slane %v3835_v4, 4  ;;  %v3840_v8 = vrot.slane %v3838_v27, 5  ;;  %v7846_v10 = vrot.slane %v3844_v3, 5  ;;  %v3850_v51 = vrot.slane %v3848_v50, 4 }
  0xeb   : > { %v7849_v25 = vld [vmem:[%s6747_s27 + $0xa0] sm:$0xf]  ;;  %v3861_v17 = vrot.slane %v3859_v52, 4  ;;  %v3864_v57 = vrot.slane %v3862_v53, 5  ;;  %v3886_v9 = vshll.u32 %v5525_v48, 16  ;;  %v3793_v26 = vor.u32 %v3792_v18, %v7807_v33 }
  0xec   : > { %v3830_v27 = vshll.u32 %v7842_v44, 16  ;;  %v7861_v3 = vld [vmem:[%s6747_s27 + $0x98] sm:$0x1]  ;;  %v3892_v50 = vshll.u32 %v7849_v25, 16  ;;  %v3896_v52 = vshrl.u32 %v7849_v25, 16  ;;  %v3841_v22 = vor.u32 %v3840_v8, %v3837_v31 }
  0xed   : > { %6189 = vmatmul.mubr.msk.bf16.gmra.mrb[28].mxu0 %vm687_vm3, %v6584_v61  ;;  %v7832_v61 = vrot.slane %v3796_v6, 5  ;;  %v3826_v6 = vrot.slane %v3824_v34, 4  ;;  %v3874_v34 = vrot.slane %v3872_v23, 4  ;;  %v3854_v33 = vshll.u32 %v7852_v2, 16 }
  0xee   : > { %6037 = vmatmul.mubr.msk.bf16.gmra.mrb[12].mxu1 %vm687_vm3, %v8548_v7  ;;  %6194 = vmatprep.mubr.msk.bf16.mxu0 %vm687_vm3, %v7574_v20  ;;  %v3816_v7 = vrot.slane %v3814_v49, 5  ;;  %v7844_v20 = vrot.slane %v3820_v46, 5  ;;  %v3806_v49 = vshll.u32 %v7824_v45, 16  ;;  %v7856_v46 = vrot.slane %v3868_v63, 5 }
  0xef   : > { %6040 = vmatprep.mubr.msk.bf16.mxu1 %vm687_vm3, %v8549_v62  ;;  %v3883_v62 = vshrl.u32 %v5525_v48, 16  ;;  %v3803_v4 = vor.u32 %v3802_v59, %v7832_v61  ;;  %v3851_v23 = vor.u32 %v3850_v51, %v7846_v10  ;;  %v3865_v59 = vor.u32 %v3864_v57, %v3861_v17  ;;  %v7894_v57 = vld [vmem:[%s6747_s27 + $0xa4] sm:$0x1] }
  0xf0   : > { %v3817_v53 = vor.u32 %v3816_v7, %v3813_v60  ;;  %v3827_v48 = vor.u32 %v3826_v6, %v7844_v20  ;;  %v3888_v18 = vrot.slane %v3886_v9, 5  ;;  %v8551_v44 = vcombine.low %v7521_v11, %v7525_v40 }
  0xf1   : > { %v3885_v63 = vrot.slane %v3883_v62, 4  ;;  %v8552_v31 = vrot.slane %v7783_v54, 5  ;;  %v3808_v51 = vrot.slane %v3806_v49, 5  ;;  %v3875_v60 = vor.u32 %v3874_v34, %v7856_v46  ;;  %v7897_v34 = vld [vmem:[%s6747_s27 + $0xac] sm:$0xf] }
  0xf2   : > { %v3878_v9 = vshll.u32 %v7861_v3, 16  ;;  %v8553_v11 = vcombine.low %v7593_v39, %v7597_v55  ;;  %v3794_v40 = vrot.slane %v3793_v26, 4  ;;  %v7890_v54 = vrot.slane %v3892_v50, 5 }
  0xf3   : > { %v3818_v7 = vrot.slane %v3817_v53, 4  ;;  %v3828_v6 = vrot.slane %v3827_v48, 4  ;;  %v3832_v8 = vrot.slane %v3830_v27, 5  ;;  %v3856_v17 = vrot.slane %v3854_v33, 5  ;;  %v7907_v48 = vld [vmem:[%s6747_s27 + $0xb0] sm:$0x1] }
  0xf4   : > { %v3842_v39 = vrot.slane %v3841_v22, 4  ;;  %v3852_v55 = vrot.slane %v3851_v23, 4  ;;  %v3866_v62 = vrot.slane %v3865_v59, 4  ;;  %v3889_v49 = vor.u32 %v3888_v18, %v3885_v63 }
  0xf5   : > { %6195 = vmatmul.mubr.msk.bf16.vlgmr.msra.gmra.mrb[0].mxu0 %vm687_vm3, %v7637_v16  ;;  %v7880_v16 = vsel %vm6999_vm7, %v7805_v28, %v8552_v31  ;;  %v3898_v28 = vrot.slane %v3896_v52, 4  ;;  %v3880_v26 = vrot.slane %v3878_v9, 5  ;;  %v3799_v52 = vsel %vm6773_vm4, %v3794_v40, %v7832_v61 }
  0xf6   : > { %6041 = vmatmul.mubr.msk.bf16.gmra.mrb[16].mxu1 %vm687_vm3, %v8551_v44  ;;  %6227 = vmatpush3.bf16.msra.mxu0 %v7578_v14  ;;  %v3804_v14 = vrot.slane %v3803_v4, 4  ;;  %v5528_v44 = vld [vmem:[%s6747_s27 + $0xa8] sm:$0xf]  ;;  %v3902_v22 = vshll.u32 %v7894_v57, 16  ;;  %v3823_v33 = vsel %vm6773_vm4, %v3818_v7, %v7844_v20  ;;  %v3833_v23 = vsel %vm6773_vm4, %v3828_v6, %v3832_v8 }
  0xf7   : > { %6044 = vmatprep.mubr.msk.bf16.mxu1 %vm687_vm3, %v8553_v11  ;;  %6198 = vmatprep.mubr.msk.bf16.mxu0 %vm687_vm3, %v7648_v29  ;;  %v3876_v29 = vrot.slane %v3875_v60, 4  ;;  %v3907_v4 = vshrl.u32 %v5528_v44, 16  ;;  %v3910_v50 = vshll.u32 %v5528_v44, 16  ;;  %v3899_v53 = vor.u32 %v3898_v28, %v7890_v54  ;;  %v5577_v11 = vld [vmem:[%s6747_s27 + $0x48] sm:$0xe] }
  0xf8   : > { %v3809_v27 = vsel %vm6773_vm4, %v3804_v14, %v3808_v51  ;;  %v3916_v59 = vshll.u32 %v7897_v34, 16  ;;  %v3920_v61 = vshrl.u32 %v7897_v34, 16  ;;  %v3847_v63 = vsel %vm6773_vm4, %v3842_v39, %v7846_v10  ;;  %v7972_v39 = vld [vmem:[%s6747_s27 + $0xb8] sm:$0xf] }
  0xf9   : > { %v3857_v18 = vsel %vm6773_vm4, %v3852_v55, %v3856_v17  ;;  %v3871_v20 = vsel %vm6773_vm4, %v3866_v62, %v7856_v46  ;;  %v3890_v31 = vrot.slane %v3889_v49, 4  ;;  %v8554_v51 = vcombine.low %v7610_v12, %v7625_v35 }
  0xfa   : > { %v3909_v10 = vrot.slane %v3907_v4, 4  ;;  %v3912_v60 = vrot.slane %v3910_v50, 5  ;;  %v3926_v9 = vshll.u32 %v7907_v48, 16  ;;  %v8555_v46 = vcombine.low %v7695_v21, %v7720_v56  ;;  %v5531_v21 = vld [vmem:[%s6747_s27 + $0xb4] sm:$0xf] }
  0xfb   : > { %v5198_v12 = vcombine.low %v7771_v42, %v7778_v47  ;;  %v8556_v35 = vsel %vm6773_vm4, %v7791_v5, %v7780_v41  ;;  %v3900_v14 = vrot.slane %v3899_v53, 4  ;;  %v3904_v28 = vrot.slane %v3902_v22, 5  ;;  %v5579_v4 = vld [vmem:[%s6747_s27 + $0x60] sm:$0xe]  ;;  %v5580_v53 = vld [vmem:[%s6747_s27 + $0x6c] sm:$0xe] }
  0xfc   : > { %v5199_v56 = vcombine.low %v7795_v43, %v7880_v16  ;;  %v7955_v44 = vcombine.low %v3799_v52, %v3809_v27  ;;  %v7957_v42 = vrot.slane %v3916_v59, 5  ;;  %v3922_v47 = vrot.slane %v3920_v61, 4  ;;  %v8565_v16 = vld [vmem:[#allocation4_spill] sm:$0xff] }
  0xfd   : > { %6199 = vmatmul.mubr.msk.bf16.gmra.mrb[4].mxu0 %vm687_vm3, %v7751_v37  ;;  %v3881_v37 = vsel %vm6773_vm4, %v3876_v29, %v3880_v26  ;;  %v7959_v41 = vcombine.low %v3823_v33, %v3833_v23  ;;  %v7961_v5 = vcombine.low %v3847_v63, %v3857_v18  ;;  %v3895_v6 = vsel %vm6773_vm4, %v3890_v31, %v7890_v54  ;;  %v8558_v23 = vld [vmem:[#allocation11_spill] sm:$0xff]  ;;  %v5534_v63 = vld [vmem:[%s6747_s27 + $0xc0] sm:$0xf]  ;;  %v8560_v18 = vld [vmem:[#allocation9_spill] sm:$0xff] }
  0xfe   : > { %6045 = vmatmul.mubr.msk.bf16.gmra.mrb[20].mxu1 %vm687_vm3, %v8554_v51  ;;  %6202 = vmatprep.mubr.msk.bf16.mxu0 %vm687_vm3, %v7765_v58  ;;  %v8557_v58 = vsel %vm6773_vm4, %v7753_v19, %v7708_v1  ;;  %v7963_v7 = vcombine.low %v3871_v20, %v3881_v37  ;;  %v5593_v1 = vrot.slane %v5577_v11, 9  ;;  %v5578_v19 = vld [vmem:[%s6747_s27 + $0x54] sm:$0xe]  ;;  %v3913_v8 = vor.u32 %v3912_v60, %v3909_v10  ;;  %v8561_v31 = vld [vmem:[#allocation10_spill] sm:$0xff] }
  0xff   : > { %6048 = vmatprep.mubr.msk.bf16.mxu1 %vm687_vm3, %v8555_v46  ;;  %v5547_v40 = vcombine.low %v8557_v58, %v8556_v35  ;;  %v7969_v17 = vrot.slane %v3926_v9, 5  ;;  %v3931_v55 = vshrl.u32 %v5531_v21, 16  ;;  %v3905_v62 = vsel %vm6773_vm4, %v3900_v14, %v3904_v28  ;;  %v8562_v9 = vld [vmem:[#allocation12_spill] sm:$0xff]  ;;  %v8021_v35 = vld [vmem:[%s6747_s27 + $0xbc] sm:$0x1] }
 0x100   : > { %v3934_v49 = vshll.u32 %v5531_v21, 16  ;;  %v4390_v29 = vrot.slane %v7603_v0, 5  ;;  %v4393_v26 = vrot.slane %v7657_v38, 5  ;;  %v3923_v50 = vor.u32 %v3922_v47, %v7957_v42  ;;  %v8024_v58 = vld [vmem:[%s6747_s27 + $0xc4] sm:$0xf] }
 0x101   : > { %v5594_v52 = vrot.slane %v5578_v19, 9  ;;  %v4397_v54 = vrot.slane %v7614_v24, 5  ;;  %v4400_v27 = vrot.slane %v7666_v15, 5  ;;  %v3940_v22 = vshll.u32 %v7972_v39, 16  ;;  %v5581_v19 = vld [vmem:[%s6747_s27 + $0x78] sm:$0xe] }
 0x102   : > { %v3944_v33 = vshrl.u32 %v7972_v39, 16  ;;  %v7989_v0 = vsel %vm6999_vm7, %v5593_v1, %v4390_v29  ;;  %v4392_v38 = vrot.slane %v4390_v29, 4  ;;  %v8559_v59 = vcombine.low %v7728_v36, %v8558_v23  ;;  %v8563_v23 = vld [vmem:[#allocation13_spill] sm:$0xff] }
 0x103   : > { %v7996_v24 = vcombine.low %v3895_v6, %v3905_v62  ;;  %v8000_v15 = vsel %vm6999_vm7, %v5594_v52, %v4397_v54  ;;  %v5595_v61 = vrot.slane %v5579_v4, 9  ;;  %v4404_v20 = vrot.slane %v8560_v18, 5  ;;  %v6585_v6 = vld [vmem:[%s6747_s27 + $0xc] sm:$0xff]  }
 0x104   : > { %v8006_v36 = vsel %vm6999_vm7, %v4392_v38, %v4393_v26  ;;  %v4407_v51 = vrot.slane %v8561_v31, 5  ;;  %v5596_v37 = vrot.slane %v5580_v53, 9  ;;  %v4411_v11 = vrot.slane %v8562_v9, 5 }
 0x105   : > { %6203 = vmatmul.mubr.msk.bf16.gmra.mrb[8].mxu0 %vm687_vm3, %v7774_v30  ;;  %v4399_v30 = vrot.slane %v4397_v54, 4  ;;  %v5610_v10 = vcombine.low %v7989_v0, %v8006_v36  ;;  %v4414_v46 = vrot.slane %v7824_v45, 5  ;;  %v8030_v14 = vsel %vm6999_vm7, %v5595_v61, %v4404_v20 }
 0x106   : > { %6049 = vmatmul.mubr.msk.bf16.gmra.mrb[24].mxu1 %vm687_vm3, %v8559_v59  ;;  %6206 = vmatprep.mubr.msk.bf16.mxu0 %vm687_vm3, %v5547_v40  ;;  %v4406_v28 = vrot.slane %v4404_v20, 4  ;;  %v8032_v21 = vrot.slane %v3931_v55, 4  ;;  %v3955_v47 = vshrl.u32 %v5534_v63, 16  ;;  %v8036_v45 = vsel %vm6999_vm7, %v5596_v37, %v4411_v11  ;;  %v5308_v55 = vld [vmem:[%s6747_s27 + $0x78] sm:$0xf]  ;;  %v8564_v59 = vld [vmem:[#allocation16_spill] sm:$0xff] }
 0x107   : > { %6052 = vmatprep.mubr.msk.bf16.mxu1 %vm687_vm3, %v5198_v12  ;;  %v8014_v60 = vsel %vm6999_vm7, %v4399_v30, %v4400_v27  ;;  %v8018_v12 = vrot.slane %v3913_v8, 4  ;;  %v4413_v1 = vrot.slane %v4411_v11, 4  ;;  %v8040_v8 = vrot.slane %v3923_v50, 4 }
 0x108   : > { %v5611_v40 = vcombine.low %v8000_v15, %v8014_v60  ;;  %v8042_v62 = vrot.slane %v3934_v49, 5  ;;  %v3958_v29 = vshll.u32 %v5534_v63, 16  ;;  %v8046_v26 = vsel %vm6999_vm7, %v4406_v28, %v4407_v51  ;;  %v8567_v28 = vld [vmem:[#allocation14_spill] sm:$0xff] }
 0x109   : > { %v8049_v4 = vrot.slane %v3940_v22, 5  ;;  %v8051_v52 = vrot.slane %v3944_v33, 4  ;;  %v5612_v54 = vcombine.low %v8030_v14, %v8046_v26  ;;  %v8057_v27 = vsel %vm6999_vm7, %v4413_v1, %v4414_v46  ;;  %v5582_v33 = vld [vmem:[%s6747_s27 + $0x84] sm:$0xe]  ;;  %v6586_v1 = vld [vmem:[%s6747_s27 + $0x18] sm:$0xff]  }
 0x10a   : > { %v3950_v49 = vshll.u32 %v8021_v35, 16  ;;  %v3964_v50 = vshll.u32 %v8024_v58, 16  ;;  %v5613_v53 = vcombine.low %v8036_v45, %v8057_v27  ;;  %v5597_v22 = vrot.slane %v5581_v19, 9  ;;  %v6648_v60 = vld [vmem:[%s6747_s27 + $0xa0] sm:$0xf] }
 0x10b   : > { %v3957_v38 = vrot.slane %v3955_v47, 4  ;;  %v4421_v30 = vrot.slane %v8564_v59, 5  ;;  %v2277_v61 = vshrl.u32 %v5308_v55, 16  ;;  %v3960_v63 = vrot.slane %v3958_v29, 5  ;;  %v5537_v29 = vld [vmem:[%s6747_s27 + $0xcc] sm:$0xf] }
 0x10c   : > { %v3968_v18 = vshrl.u32 %v8024_v58, 16  ;;  %v2280_v43 = vshll.u32 %v5308_v55, 16  ;;  %v5598_v37 = vrot.slane %v5582_v33, 9  ;;  %v3919_v9 = vsel %vm6773_vm4, %v8018_v12, %v7957_v42  ;;  %v8100_v55 = vld [vmem:[%s6747_s27 + $0xd0] sm:$0xf] }
 0x10d   : > { %6207 = vmatmul.mubr.msk.bf16.gmra.mrb[12].mxu0 %vm687_vm3, %v7955_v44  ;;  %v4418_v44 = vrot.slane %v8563_v23, 5  ;;  %v2279_v51 = vrot.slane %v2277_v61, 4  ;;  %v3937_v11 = vor.u32 %v8042_v62, %v8032_v21  ;;  %v4425_v47 = vrot.slane %v8567_v28, 5  ;;  %v6587_v21 = vld [vmem:[%s6747_s27 + $0x24] sm:$0xff]   ;;  %v6652_v27 = vld [vmem:[%s6747_s27 + $0xac] sm:$0xf] }
 0x10e   : > { %6053 = vmatmul.mubr.msk.bf16.gmra.mrb[28].mxu1 %vm687_vm3, %v5199_v56  ;;  %6210 = vmatprep.mubr.msk.bf16.mxu0 %vm687_vm3, %v7959_v41  ;;  %v8566_v56 = vld [vmem:[#allocation5_spill] sm:$0xff]  ;;  %v2282_v46 = vrot.slane %v2280_v43, 5  ;;  %v3929_v19 = vsel %vm6773_vm4, %v8040_v8, %v7969_v17  ;;  %v4428_v12 = vrot.slane %v7852_v2, 5  ;;  %v8108_v62 = vrot.slane %v3964_v50, 5  ;;  %v5583_v8 = vld [vmem:[%s6747_s27 + $0x90] sm:$0xe] }
 0x10f   : > { %6058 = vmatprep.mubr.msk.bf16.mxu1 %vm687_vm3, %v6585_v6  ;;  %v2299_v41 = vsel %vm6773_vm4, %v8566_v56, %v8565_v16  ;;  %v8082_v20 = vsel %vm6999_vm7, %v5597_v22, %v4418_v44  ;;  %v4420_v31 = vrot.slane %v4418_v44, 4  ;;  %v3947_v6 = vor.u32 %v8051_v52, %v8049_v4  ;;  %v8114_v52 = vld [vmem:[%s6747_s27 + $0xc8] sm:$0x1]  ;;  %v8569_v16 = vld [vmem:[#allocation2_spill] sm:$0xff] }
 0x110   : > { %v3970_v22 = vrot.slane %v3968_v18, 4  ;;  %v2283_v17 = vor.u32 %v2282_v46, %v2279_v51  ;;  %v3952_v23 = vrot.slane %v3950_v49, 5  ;;  %v3961_v44 = vor.u32 %v3960_v63, %v3957_v38  ;;  %v8570_v51 = vld [vmem:[#allocation3_spill] sm:$0xff] }
 0x111   : > { %v8104_v42 = vsel %vm6999_vm7, %v4420_v31, %v4421_v30  ;;  %v8118_v59 = vsel %vm6999_vm7, %v5598_v37, %v4425_v47  ;;  %v4427_v30 = vrot.slane %v4425_v47, 4  ;;  %v3979_v2 = vshrl.u32 %v5537_v29, 16 }
 0x112   : > { %v5614_v33 = vcombine.low %v8082_v20, %v8104_v42  ;;  %v3982_v50 = vshll.u32 %v5537_v29, 16  ;;  %v3988_v61 = vshll.u32 %v8100_v55, 16  ;;  %v2284_v18 = vrot.slane %v2283_v17, 4  ;;  %v6588_v29 = vld [vmem:[%s6747_s27 + $0x30] sm:$0xff]  }
 0x113   : > { %v3992_v49 = vshrl.u32 %v8100_v55, 16  ;;  %v8129_v38 = vsel %vm6999_vm7, %v4427_v30, %v4428_v12  ;;  %v5599_v63 = vrot.slane %v5583_v8, 9  ;;  %v3971_v56 = vor.u32 %v3970_v22, %v8108_v62 }
 0x114   : > { %v3974_v31 = vshll.u32 %v8114_v52, 16  ;;  %v5615_v37 = vcombine.low %v8118_v59, %v8129_v38  ;;  %v5553_v46 = vcombine.low %v3919_v9, %v3929_v19  ;;  %v3938_v28 = vrot.slane %v3937_v11, 4  ;;  %v5584_v11 = vld [vmem:[%s6747_s27 + $0x9c] sm:$0xe] }
 0x115   : > { %6211 = vmatmul.mubr.msk.bf16.gmra.mrb[16].mxu0 %vm687_vm3, %v7961_v5  ;;  %v8568_v5 = vld [vmem:[#allocation15_spill] sm:$0xff]  ;;  %v3948_v47 = vrot.slane %v3947_v6, 4  ;;  %v3962_v12 = vrot.slane %v3961_v44, 4  ;;  %v4435_v8 = vrot.slane %v7861_v3, 5  ;;  %v3981_v30 = vrot.slane %v3979_v2, 4  ;;  %v6589_v19 = vld [vmem:[%s6747_s27 + $0x3c] sm:$0xff]  }
 0x116   : > { %6059 = vmatmul.mubr.msk.bf16.vlgmr.msra.gmra.mrb[0].mxu1 %vm687_vm3, %v6586_v1  ;;  %6214 = vmatprep.mubr.msk.bf16.mxu0 %vm687_vm3, %v7963_v7  ;;  %v4432_v43 = vrot.slane %v8568_v5, 5  ;;  %v2289_v7 = vsel %vm6773_vm4, %v2284_v18, %v8570_v51  ;;  %v3984_v18 = vrot.slane %v3982_v50, 5  ;;  %v8152_v5 = vrot.slane %v3988_v61, 5 }
 0x117   : > { %6261 = vmatpush3.bf16.msra.mxu1 %v8569_v16  ;;  %6062 = vmatprep.mubr.msk.bf16.mxu1 %vm687_vm3, %v6587_v21  ;;  %v8141_v1 = vcombine.low %v2289_v7, %v2299_v41  ;;  %v8145_v21 = vld [vmem:[%s6747_s27 + $0xd4] sm:$0x1]  ;;  %v3994_v9 = vrot.slane %v3992_v49, 4  ;;  %v3972_v41 = vrot.slane %v3971_v56, 4  ;;  %v3976_v6 = vrot.slane %v3974_v31, 5 }
 0x118   : > { %v8149_v22 = vsel %vm6999_vm7, %v5599_v63, %v4432_v43  ;;  %v4434_v17 = vrot.slane %v4432_v43, 4  ;;  %v3943_v63 = vsel %vm6773_vm4, %v3938_v28, %v8049_v4  ;;  %v3953_v2 = vsel %vm6773_vm4, %v3948_v47, %v3952_v23  ;;  %v6639_v16 = vld [vmem:[%s6747_s27 + $0x1c] sm:$0xf]  ;;  %v5585_v28 = vld [vmem:[%s6747_s27 + $0xa8] sm:$0xe] }
 0x119   : > { %v3998_v50 = vshll.u32 %v8145_v21, 16  ;;  %v5600_v61 = vrot.slane %v5584_v11, 9  ;;  %v4439_v49 = vrot.slane %v7849_v25, 5  ;;  %v3967_v4 = vsel %vm6773_vm4, %v3962_v12, %v8108_v62  ;;  %v5573_v62 = vld [vmem:[%s6747_s27 + $0x18] sm:$0xe]  ;;  %v6590_v47 = vld [vmem:[%s6747_s27 + $0x48] sm:$0xff]  }
 0x11a   : > { %v8158_v44 = vsel %vm6999_vm7, %v4434_v17, %v4435_v8  ;;  %v3995_v43 = vor.u32 %v3994_v9, %v8152_v5  ;;  %v4442_v23 = vrot.slane %v7894_v57, 5  ;;  %v3977_v25 = vsel %vm6773_vm4, %v3972_v41, %v3976_v6  ;;  %v6640_v11 = vld [vmem:[%s6747_s27 + $0x20] sm:$0x1] }
 0x11b   : > { %v5616_v3 = vcombine.low %v8149_v22, %v8158_v44  ;;  %v4362_v56 = vrot.slane %v6639_v16, 5  ;;  %v8184_v31 = vsel %vm6999_vm7, %v5600_v61, %v4439_v49  ;;  %v4441_v51 = vrot.slane %v4439_v49, 4  ;;  %v5586_v49 = vld [vmem:[%s6747_s27 + $0xb4] sm:$0xe] }
 0x11c   : > { %v5554_v7 = vcombine.low %v3943_v63, %v3953_v2  ;;  %v3996_v17 = vrot.slane %v3995_v43, 4  ;;  %v5601_v41 = vrot.slane %v5585_v28, 9  ;;  %v4446_v6 = vrot.slane %v7897_v34, 5  ;;  %v5574_v2 = vld [vmem:[%s6747_s27 + $0x24] sm:$0xe] }
 0x11d   : > { %6215 = vmatmul.mubr.msk.bf16.gmra.mrb[20].mxu0 %vm687_vm3, %v7996_v24  ;;  %v3985_v24 = vor.u32 %v3984_v18, %v3981_v30  ;;  %v8189_v57 = vsel %vm6999_vm7, %v4441_v51, %v4442_v23  ;;  %v6591_v30 = vld [vmem:[%s6747_s27 + $0x54] sm:$0xff]   ;;  %v5589_v18 = vrot.slane %v5573_v62, 9  ;;  %v4364_v9 = vrot.slane %v4362_v56, 4  ;;  %v6643_v28 = vld [vmem:[%s6747_s27 + $0x2c] sm:$0x1] }
 0x11e   : > { %6063 = vmatmul.mubr.msk.bf16.gmra.mrb[4].mxu1 %vm687_vm3, %v6588_v29  ;;  %6218 = vmatprep.mubr.msk.bf16.mxu0 %vm687_vm3, %v5553_v46  ;;  %v4000_v46 = vrot.slane %v3998_v50, 5  ;;  %v5555_v29 = vcombine.low %v3967_v4, %v3977_v25  ;;  %v5617_v8 = vcombine.low %v8184_v31, %v8189_v57  ;;  %v4449_v63 = vrot.slane %v7907_v48, 5  ;;  %v6641_v50 = vld [vmem:[%s6747_s27 + $0x28] sm:$0xf]  ;;  %v5575_v25 = vld [vmem:[%s6747_s27 + $0x30] sm:$0xe] }
 0x11f   : > { %6066 = vmatprep.mubr.msk.bf16.mxu1 %vm687_vm3, %v6589_v19  ;;  %v3986_v12 = vrot.slane %v3985_v24, 4  ;;  %v4365_v19 = vrot.slane %v6640_v11, 5  ;;  %v4369_v61 = vrot.slane %v6641_v50, 5  ;;  %v8212_v48 = vsel %vm6999_vm7, %v5601_v41, %v4446_v6  ;;  %v6593_v11 = vld [vmem:[%s6747_s27 + $0x6c] sm:$0xff]   ;;  %v8571_v41 = vld [vmem:[#allocation6_spill] sm:$0xff] }
 0x120   : > { %v4001_v34 = vsel %vm6773_vm4, %v3996_v17, %v4000_v46  ;;  %v4448_v24 = vrot.slane %v4446_v6, 4  ;;  %v4363_v43 = vsel %vm6999_vm7, %v5589_v18, %v4362_v56  ;;  %v5590_v51 = vrot.slane %v5574_v2, 9  ;;  %v5587_v50 = vld [vmem:[%s6747_s27 + $0xc0] sm:$0xe]  ;;  %v6657_v31 = vld [vmem:[%s6747_s27 + $0xc8] sm:$0x1] }
 0x121   : > { %v3991_v4 = vsel %vm6773_vm4, %v3986_v12, %v8152_v5  ;;  %v4366_v23 = vsel %vm6999_vm7, %v4364_v9, %v4365_v19  ;;  %v6642_v5 = vld [vmem:[%s6747_s27 + $0x34] sm:$0xf]  ;;  %v6592_v12 = vld [vmem:[%s6747_s27 + $0x60] sm:$0xff]   ;;  %v5591_v18 = vrot.slane %v5575_v25, 9  ;;  %v4456_v9 = vrot.slane %v8021_v35, 5 }
 0x122   : > { %v4376_v16 = vrot.slane %v6642_v5, 5  ;;  %v8223_v62 = vsel %vm6999_vm7, %v4448_v24, %v4449_v63  ;;  %v5556_v46 = vcombine.low %v3991_v4, %v4001_v34  ;;  %v5606_v17 = vcombine.low %v4363_v43, %v4366_v23  ;;  %v5576_v24 = vld [vmem:[%s6747_s27 + $0x3c] sm:$0xe] }
 0x123   : > { %v5618_v56 = vcombine.low %v8212_v48, %v8223_v62  ;;  %v4379_v6 = vrot.slane %v8571_v41, 5  ;;  %v4370_v35 = vsel %vm6999_vm7, %v5590_v51, %v4369_v61  ;;  %v5603_v5 = vrot.slane %v5587_v50, 9 }
 0x124   : > { %v4378_v19 = vrot.slane %v4376_v16, 4  ;;  %v4377_v23 = vsel %vm6999_vm7, %v5591_v18, %v4376_v16  ;;  %v4463_v51 = vrot.slane %v8114_v52, 5  ;;  %v2440_v57 = vshll.u32 %v6657_v31, 16 }
 0x125   : > { %6219 = vmatmul.mubr.msk.bf16.gmra.mrb[24].mxu0 %vm687_vm3, %v5554_v7  ;;  %v5602_v7 = vrot.slane %v5586_v49, 9 }
 0x126   : > { %6067 = vmatmul.mubr.msk.bf16.gmra.mrb[8].mxu1 %vm687_vm3, %v6590_v47  ;;  %6222 = vmatprep.mubr.msk.bf16.mxu0 %vm687_vm3, %v5555_v29  ;;  %v4372_v47 = vrot.slane %v6643_v28, 5  ;;  %v4453_v29 = vrot.slane %v7972_v39, 5  ;;  %v8572_v39 = vld [vmem:[#allocation7_spill] sm:$0xff]  ;;  %v4380_v25 = vsel %vm6999_vm7, %v4378_v19, %v4379_v6  ;;  %v5592_v28 = vrot.slane %v5576_v24, 9 }
 0x127   : > { %6070 = vmatprep.mubr.msk.bf16.mxu1 %vm687_vm3, %v6591_v30  ;;  %v4371_v30 = vrot.slane %v4369_v61, 4  ;;  %v4383_v49 = vrot.slane %v8572_v39, 5  ;;  %v4460_v61 = vrot.slane %v8024_v58, 5  ;;  %v6644_v39 = vld [vmem:[%s6747_s27 + $0x70] sm:$0xf]  ;;  %v4467_v24 = vrot.slane %v8100_v55, 5 }
 0x128   : > { %v8235_v63 = vsel %vm6999_vm7, %v5602_v7, %v4453_v29  ;;  %v4455_v2 = vrot.slane %v4453_v29, 4  ;;  %v5305_v7 = vld [vmem:[%s6747_s27 + $0x6c] sm:$0xf]  ;;  %v8573_v29 = vld [vmem:[#allocation8_spill] sm:$0xff] }
 0x129   : > { %v4373_v34 = vsel %vm6999_vm7, %v4371_v30, %v4372_v47  ;;  %v4385_v47 = vrot.slane %v4383_v49, 4  ;;  %v6594_v30 = vld [vmem:[%s6747_s27 + $0x78] sm:$0xff]   ;;  %v8266_v16 = vsel %vm6999_vm7, %v5603_v5, %v4460_v61  ;;  %v4462_v18 = vrot.slane %v4460_v61, 4 }
 0x12a   : > { %v8242_v4 = vsel %vm6999_vm7, %v4455_v2, %v4456_v9  ;;  %v5608_v9 = vcombine.low %v4377_v23, %v4380_v25  ;;  %v2253_v19 = vshrl.u32 %v5305_v7, 16  ;;  %v2256_v41 = vshll.u32 %v5305_v7, 16 }
 0x12b   : > { %v5619_v43 = vcombine.low %v8235_v63, %v8242_v4  ;;  %v8271_v58 = vsel %vm6999_vm7, %v4462_v18, %v4463_v51  ;;  %v4384_v6 = vsel %vm6999_vm7, %v5592_v28, %v4383_v49  ;;  %v4470_v49 = vrot.slane %v8145_v21, 5  ;;  %v6596_v51 = vld [vmem:[%s6747_s27 + $0x90] sm:$0xff]   ;;  %v6597_v21 = vld [vmem:[%s6747_s27 + $0x9c] sm:$0xff]  }
 0x12c   : > { %v5620_v50 = vcombine.low %v8266_v16, %v8271_v58  ;;  %v2255_v23 = vrot.slane %v2253_v19, 4  ;;  %v2258_v25 = vrot.slane %v2256_v41, 5  ;;  %v4469_v7 = vrot.slane %v4467_v24, 4 }
 0x12d   : > { %6223 = vmatmul.mubr.msk.bf16.gmra.mrb[28].mxu0 %vm687_vm3, %v5556_v46  ;;  %v5607_v46 = vcombine.low %v4370_v35, %v4373_v34  ;;  %v2262_v35 = vshll.u32 %v6644_v39, 16  ;;  %v2266_v34 = vshrl.u32 %v6644_v39, 16 }
 0x12e   : > { %6071 = vmatmul.mubr.msk.bf16.gmra.mrb[12].mxu1 %vm687_vm3, %v6592_v12  ;;  %6228 = vmatprep.mubr.msk.bf16.mxu0 %vm687_vm3, %v5606_v17  ;;  %v4386_v12 = vrot.slane %v8573_v29, 5  ;;  %v5588_v17 = vld [vmem:[%s6747_s27 + $0xcc] sm:$0xe]  ;;  %v8293_v55 = vsel %vm6999_vm7, %v4469_v7, %v4470_v49 }
 0x12f   : > { %6074 = vmatprep.mubr.msk.bf16.mxu1 %vm687_vm3, %v6593_v11  ;;  %v6595_v11 = vld [vmem:[%s6747_s27 + $0x84] sm:$0xff]   ;;  %v5604_v52 = vrot.slane %v5588_v17, 9  ;;  %v2268_v28 = vrot.slane %v2266_v34, 4  ;;  %v6645_v17 = vld [vmem:[%s6747_s27 + $0x74] sm:$0x1] }
 0x130   : > { %v4387_v2 = vsel %vm6999_vm7, %v4385_v47, %v4386_v12  ;;  %v5311_v47 = vld [vmem:[%s6747_s27 + $0x84] sm:$0xf]  ;;  %v2259_v12 = vor.u32 %v2258_v25, %v2255_v23  ;;  %v6599_v34 = vld [vmem:[%s6747_s27 + $0xb4] sm:$0xff]  }
 0x131   : > { %v8288_v5 = vsel %vm6999_vm7, %v5604_v52, %v4467_v24  ;;  %v5609_v61 = vcombine.low %v4384_v6, %v4387_v2  ;;  %v2304_v18 = vshll.u32 %v5311_v47, 16  ;;  %v5314_v6 = vld [vmem:[%s6747_s27 + $0x90] sm:$0xf]  ;;  %v6598_v2 = vld [vmem:[%s6747_s27 + $0xa8] sm:$0xff]  }
 0x132   : > { %v5621_v29 = vcombine.low %v8288_v5, %v8293_v55  ;;  %v2260_v52 = vrot.slane %v2259_v12, 4  ;;  %v2325_v23 = vshrl.u32 %v5314_v6, 16  ;;  %v2328_v25 = vshll.u32 %v5314_v6, 16 }
 0x133   : > { %v2358_v12 = vshll.u32 %v6648_v60, 16 }
 0x134   : > { %v2330_v14 = vrot.slane %v2328_v25, 5  ;;  %v6651_v25 = vld [vmem:[%s6747_s27 + $0xa4] sm:$0x1] }
 0x135   : > { %6229 = vmatmul.mubr.msk.bf16.vlgmr.msra.gmra.mrb[0].mxu0 %vm687_vm3, %v5607_v46  ;;  %v2264_v46 = vrot.slane %v2262_v35, 5  ;;  %v5317_v35 = vld [vmem:[%s6747_s27 + $0x9c] sm:$0xf]  ;;  %v8335_v6 = vrot.slane %v2358_v12, 5 }
 0x136   : > { %6075 = vmatmul.mubr.msk.bf16.gmra.mrb[16].mxu1 %vm687_vm3, %v6594_v30  ;;  %6232 = vmatprep.mubr.msk.bf16.mxu0 %vm687_vm3, %v5608_v9  ;;  %v2272_v30 = vshll.u32 %v6645_v17, 16  ;;  %v2301_v9 = vshrl.u32 %v5311_v47, 16  ;;  %v2352_v47 = vshll.u32 %v5317_v35, 16  ;;  %v6649_v17 = vld [vmem:[%s6747_s27 + $0x8c] sm:$0x1] }
 0x137   : > { %6078 = vmatprep.mubr.msk.bf16.mxu1 %vm687_vm3, %v6595_v11  ;;  %v2269_v13 = vor.u32 %v2268_v28, %v2264_v46  ;;  %v6646_v11 = vld [vmem:[%s6747_s27 + $0x88] sm:$0xf]  ;;  %v2265_v7 = vsel %vm6773_vm4, %v2260_v52, %v2264_v46 }
 0x138   : > { %v2310_v19 = vshll.u32 %v6646_v11, 16  ;;  %v2314_v41 = vshrl.u32 %v6646_v11, 16  ;;  %v2274_v0 = vrot.slane %v2272_v30, 5  ;;  %v2303_v36 = vrot.slane %v2301_v9, 4 }
 0x139   : > { %v2270_v39 = vrot.slane %v2269_v13, 4  ;;  %v2320_v30 = vshll.u32 %v6649_v17, 16  ;;  %v2327_v9 = vrot.slane %v2325_v23, 4  ;;  %v2354_v11 = vrot.slane %v2352_v47, 5 }
 0x13a   : > { %v8312_v24 = vrot.slane %v2310_v19, 5  ;;  %v2316_v49 = vrot.slane %v2314_v41, 4  ;;  %v6600_v19 = vld [vmem:[%s6747_s27 + $0xc0] sm:$0xff]  }
 0x13b   : > { %v2275_v46 = vsel %vm6773_vm4, %v2270_v39, %v2274_v0  ;;  %v5320_v39 = vld [vmem:[%s6747_s27 + $0xa8] sm:$0xf] }
 0x13c   : > { %v2317_v13 = vor.u32 %v2316_v49, %v8312_v24  ;;  %v5338_v41 = vcombine.low %v2265_v7, %v2275_v46  ;;  %v2368_v7 = vshll.u32 %v6651_v25, 16  ;;  %v2376_v45 = vshll.u32 %v5320_v39, 16 }
 0x13d   : > { %6233 = vmatmul.mubr.msk.bf16.gmra.mrb[4].mxu0 %vm687_vm3, %v5609_v61  ;;  %v6647_v61 = vld [vmem:[%s6747_s27 + $0x94] sm:$0xf] }
 0x13e   : > { %6079 = vmatmul.mubr.msk.bf16.gmra.mrb[20].mxu1 %vm687_vm3, %v6596_v51  ;;  %6236 = vmatprep.mubr.msk.bf16.mxu0 %vm687_vm3, %v5610_v10  ;;  %v2306_v10 = vrot.slane %v2304_v18, 5  ;;  %v2334_v51 = vshll.u32 %v6647_v61, 16  ;;  %v2338_v28 = vshrl.u32 %v6647_v61, 16  ;;  %v2318_v0 = vrot.slane %v2317_v13, 4 }
 0x13f   : > { %6082 = vmatprep.mubr.msk.bf16.mxu1 %vm687_vm3, %v6597_v21  ;;  %v2349_v21 = vshrl.u32 %v5317_v35, 16  ;;  %v6650_v35 = vld [vmem:[%s6747_s27 + $0x98] sm:$0x1]  ;;  %v2373_v61 = vshrl.u32 %v5320_v39, 16  ;;  %v5326_v39 = vld [vmem:[%s6747_s27 + $0xc0] sm:$0xf] }
 0x140   : > { %v2307_v15 = vor.u32 %v2306_v10, %v2303_v36  ;;  %v8332_v26 = vrot.slane %v2334_v51, 5  ;;  %v2322_v36 = vrot.slane %v2320_v30, 5  ;;  %v2331_v10 = vor.u32 %v2330_v14, %v2327_v9  ;;  %v5323_v51 = vld [vmem:[%s6747_s27 + $0xb4] sm:$0xf] }
 0x141   : > { %v2351_v18 = vrot.slane %v2349_v21, 4  ;;  %v2386_v21 = vshrl.u32 %v6652_v27, 16  ;;  %v2397_v20 = vshrl.u32 %v5323_v51, 16  ;;  %v2400_v42 = vshll.u32 %v5323_v51, 16 }
 0x142   : > { %v2308_v52 = vrot.slane %v2307_v15, 4  ;;  %v2323_v46 = vsel %vm6773_vm4, %v2318_v0, %v2322_v36  ;;  %v2332_v15 = vrot.slane %v2331_v10, 4  ;;  %v2370_v30 = vrot.slane %v2368_v7, 5 }
 0x143   : > { %v2355_v23 = vor.u32 %v2354_v11, %v2351_v18  ;;  %v2375_v9 = vrot.slane %v2373_v61, 4  ;;  %v2388_v11 = vrot.slane %v2386_v21, 4  ;;  %v6656_v61 = vld [vmem:[%s6747_s27 + $0xbc] sm:$0x1] }
 0x144   : > { %v2313_v47 = vsel %vm6773_vm4, %v2308_v52, %v8312_v24  ;;  %v2337_v0 = vsel %vm6773_vm4, %v2332_v15, %v8332_v26  ;;  %v2416_v22 = vshll.u32 %v6656_v61, 16 }
 0x145   : > { %6237 = vmatmul.mubr.msk.bf16.gmra.mrb[8].mxu0 %vm687_vm3, %v5611_v40  ;;  %v2362_v40 = vshrl.u32 %v6648_v60, 16  ;;  %v2356_v17 = vrot.slane %v2355_v23, 4  ;;  %v5340_v24 = vcombine.low %v2313_v47, %v2323_v46 }
 0x146   : > { %6083 = vmatmul.mubr.msk.bf16.gmra.mrb[24].mxu1 %vm687_vm3, %v6598_v2  ;;  %6240 = vmatprep.mubr.msk.bf16.mxu0 %vm687_vm3, %v5612_v54  ;;  %v2340_v54 = vrot.slane %v2338_v28, 4 }
 0x147   : > { %6086 = vmatprep.mubr.msk.bf16.mxu1 %vm687_vm3, %v6599_v34  ;;  %v2364_v2 = vrot.slane %v2362_v40, 4  ;;  %v2344_v34 = vshll.u32 %v6650_v35, 16  ;;  %v2361_v10 = vsel %vm6773_vm4, %v2356_v17, %v8335_v6  ;;  %v2442_v17 = vrot.slane %v2440_v57, 5 }
 0x148   : > { %v2341_v49 = vor.u32 %v2340_v54, %v8332_v26  ;;  %v2378_v54 = vrot.slane %v2376_v45, 5  ;;  %v6654_v26 = vld [vmem:[%s6747_s27 + $0xb0] sm:$0x1] }
 0x149   : > { %v2365_v28 = vor.u32 %v2364_v2, %v8335_v6  ;;  %v2346_v60 = vrot.slane %v2344_v34, 5  ;;  %v2392_v35 = vshll.u32 %v6654_v26, 16  ;;  %v2421_v34 = vshrl.u32 %v5326_v39, 16 }
 0x14a   : > { %v2342_v13 = vrot.slane %v2341_v49, 4  ;;  %v2379_v38 = vor.u32 %v2378_v54, %v2375_v9  ;;  %v2424_v6 = vshll.u32 %v5326_v39, 16  ;;  %v6655_v49 = vld [vmem:[%s6747_s27 + $0xc4] sm:$0xf] }
 0x14b   : > { %v2366_v14 = vrot.slane %v2365_v28, 4  ;;  %v2430_v23 = vshll.u32 %v6655_v49, 16  ;;  %v2434_v25 = vshrl.u32 %v6655_v49, 16  ;;  %v2394_v45 = vrot.slane %v2392_v35, 5 }
 0x14c   : > { %v2347_v36 = vsel %vm6773_vm4, %v2342_v13, %v2346_v60  ;;  %v2380_v51 = vrot.slane %v2379_v38, 4  ;;  %v2418_v60 = vrot.slane %v2416_v22, 5 }
 0x14d   : > { %6241 = vmatmul.mubr.msk.bf16.gmra.mrb[12].mxu0 %vm687_vm3, %v5613_v53  ;;  %v2382_v53 = vshll.u32 %v6652_v27, 16  ;;  %v2371_v59 = vsel %vm6773_vm4, %v2366_v14, %v2370_v30  ;;  %v5341_v44 = vcombine.low %v2337_v0, %v2347_v36  ;;  %v2423_v27 = vrot.slane %v2421_v34, 4 }
 0x14e   : > { %6087 = vmatmul.mubr.msk.bf16.gmra.mrb[28].mxu1 %vm687_vm3, %v6600_v19  ;;  %6244 = vmatprep.mubr.msk.bf16.mxu0 %vm687_vm3, %v5614_v33  ;;  %v6653_v33 = vld [vmem:[%s6747_s27 + $0xb8] sm:$0xf]  ;;  %v2399_v19 = vrot.slane %v2397_v20, 4  ;;  %v2432_v21 = vrot.slane %v2430_v23, 5  ;;  %v2436_v47 = vrot.slane %v2434_v25, 4 }
 0x14f   : > { %6108 = vmatprep.mubr.msk.bf16.mxu1 %vm687_vm3, %v5338_v41  ;;  %v2406_v12 = vshll.u32 %v6653_v33, 16  ;;  %v2410_v40 = vshrl.u32 %v6653_v33, 16  ;;  %v2384_v18 = vrot.slane %v2382_v53, 5  ;;  %v2402_v41 = vrot.slane %v2400_v42, 5 }
 0x150   : > { %v2426_v53 = vrot.slane %v2424_v6, 5 }
 0x151   : > { %v2408_v52 = vrot.slane %v2406_v12, 5  ;;  %v2412_v2 = vrot.slane %v2410_v40, 4  ;;  %v2385_v20 = vsel %vm6773_vm4, %v2380_v51, %v2384_v18  ;;  %v2437_v12 = vor.u32 %v2436_v47, %v2432_v21 }
 0x152   : > { %v2427_v33 = vor.u32 %v2426_v53, %v2423_v27 }
 0x153   : > { %v2413_v7 = vor.u32 %v2412_v2, %v2408_v52  ;;  %v2438_v13 = vrot.slane %v2437_v12, 4  ;;  %v8434_v2 = vld [vmem:[%s8505_s2] ss:$0 sm:$0xff] }
 0x154   : > { %v2428_v40 = vrot.slane %v2427_v33, 4 }
 0x155   : > { %6245 = vmatmul.mubr.msk.bf16.gmra.mrb[16].mxu0 %vm687_vm3, %v5615_v37  ;;  %v2389_v37 = vor.u32 %v2388_v11, %v2384_v18  ;;  %v2414_v15 = vrot.slane %v2413_v7, 4  ;;  %v2443_v9 = vsel %vm6773_vm4, %v2438_v13, %v2442_v17 }
 0x156   : > { %6109 = vmatmul.mubr.msk.bf16.vlgmr.msra.gmra.mrb[16].mxu1 %vm687_vm3, %v8141_v1  ;;  %6248 = vmatprep.mubr.msk.bf16.mxu0 %vm687_vm3, %v5616_v3  ;;  %v2403_v1 = vor.u32 %v2402_v41, %v2399_v19  ;;  %v5342_v3 = vcombine.low %v2361_v10, %v2371_v59  ;;  %v2433_v30 = vsel %vm6773_vm4, %v2428_v40, %v2432_v21 }
 0x157   : > { %6112 = vmatprep.mubr.msk.bf16.mxu1 %vm687_vm3, %v5340_v24  ;;  %v2390_v28 = vrot.slane %v2389_v37, 4  ;;  %v2419_v48 = vsel %vm6773_vm4, %v2414_v15, %v2418_v60  ;;  %v5345_v14 = vcombine.low %v2433_v30, %v2443_v9 }
 0x158   : > { %v2404_v46 = vrot.slane %v2403_v1, 4 }
 0x159   : > { %v2395_v42 = vsel %vm6773_vm4, %v2390_v28, %v2394_v45 }
 0x15a   : > { %v5343_v62 = vcombine.low %v2385_v20, %v2395_v42 }
 0x15d   : > { %6249 = vmatmul.mubr.msk.bf16.gmra.mrb[20].mxu0 %vm687_vm3, %v5617_v8  ;;  %v2409_v8 = vsel %vm6773_vm4, %v2404_v46, %v2408_v52 }
 0x15e   : > { %6113 = vmatmul.mubr.msk.bf16.gmra.mrb[20].mxu1 %vm687_vm3, %v5341_v44  ;;  %6252 = vmatprep.mubr.msk.bf16.mxu0 %vm687_vm3, %v5618_v56  ;;  %v5344_v56 = vcombine.low %v2409_v8, %v2419_v48 }
 0x15f   : > { %6116 = vmatprep.mubr.msk.bf16.mxu1 %vm687_vm3, %v5342_v3 }
 0x165   : > { %6253 = vmatmul.mubr.msk.bf16.gmra.mrb[24].mxu0 %vm687_vm3, %v5619_v43 }
 0x166   : > { %6117 = vmatmul.mubr.msk.bf16.gmra.mrb[24].mxu1 %vm687_vm3, %v5343_v62  ;;  %6256 = vmatprep.mubr.msk.bf16.mxu0 %vm687_vm3, %v5620_v50 }
 0x167   : > { %6120 = vmatprep.mubr.msk.bf16.mxu1 %vm687_vm3, %v5344_v56 }
 0x16d   : > { %6257 = vmatmul.mubr.msk.bf16.gmra.mrb[28].mxu0 %vm687_vm3, %v5621_v29 }
 0x16e   : > { %6121 = vmatmul.mubr.msk.bf16.gmra.mrb[28].mxu1 %vm687_vm3, %v5345_v14 }
 0x1e9   : > { %v6060_v63 = vpop.f32.mrb[0].mxu1 }
 0x1ea   : > { %v1853_v4 = vpop.f32.mrb[1].mxu1 }
 0x1eb   : > { %v6061_v43 = vpop.f32.mrb[2].mxu1 }
 0x1ec   : > { %v1856_v16 = vpop.f32.mrb[3].mxu1 }
 0x1f1   : > { %v6064_v58 = vpop.f32.mrb[4].mxu1 }
 0x1f2   : > { %v1869_v50 = vpop.f32.mrb[5].mxu1 }
 0x1f3   : > { %v6065_v54 = vpop.f32.mrb[6].mxu1 }
 0x1f4   : > { %v1872_v18 = vpop.f32.mrb[7].mxu1 }
 0x1f9   : > { %v6068_v11 = vpop.f32.mrb[8].mxu1 }
 0x1fa   : > { %v1885_v24 = vpop.f32.mrb[9].mxu1 }
 0x1fb   : > { %v6069_v32 = vpop.f32.mrb[10].mxu1 }
 0x1fc   : > { %v1888_v19 = vpop.f32.mrb[11].mxu1 }
 0x201   : > { %v8423_v41 = vpop.f32.mrb[12].mxu1 }
 0x202   : > { %v8425_v5 = vpop.f32.mrb[13].mxu1 }
 0x203   : > { %v8427_v55 = vpop.f32.mrb[14].mxu1 }
 0x204   : > { %v8429_v29 = vpop.f32.mrb[15].mxu1 }
 0x208   : > { %v6230_v52 = vpop.f32.mrb[0].mxu0 }
 0x209   : > { %v6262_v39 = vadd.f32 %v6230_v52, %v6060_v63  ;;  %v4607_v0 = vpop.f32.mrb[1].mxu0 }
 0x20a   : > { %v6263_v36 = vadd.f32 %v4607_v0, %v1853_v4  ;;  %v6231_v10 = vpop.f32.mrb[2].mxu0 }
 0x20b   : > { %v4775_v59 = vadd.f32 %v6262_v39, %v8434_v2  ;;  %v6264_v38 = vadd.f32 %v6231_v10, %v6061_v43  ;;  %v4610_v37 = vpop.f32.mrb[3].mxu0 }
 0x20c   : > { %v4773_v26 = vadd.f32 %v6263_v36, %v8434_v2  ;;  %v6265_v35 = vadd.f32 %v4610_v37, %v1856_v16 }
 0x20d   : > { %v4776_v34 = vadd.f32 %v6264_v38, %v8434_v2  ;;  %v4807_v49 = vmax.f32 %v4775_v59, 0.0 }
 0x20e   : > { %v4774_v6 = vadd.f32 %v6265_v35, %v8434_v2  ;;  %v4805_v25 = vmax.f32 %v4773_v26, 0.0 }
 0x20f   : > { %v4808_v23 = vmax.f32 %v4776_v34, 0.0 }
 0x210   : > { %v4806_v1 = vmax.f32 %v4774_v6, 0.0  ;;  %v6234_v7 = vpop.f32.mrb[4].mxu0 }
 0x211   : > { %v5714_v61 = vpack.c.bf16 %v4808_v23, %v4807_v49  ;;  %v6266_v22 = vadd.f32 %v6234_v7, %v6064_v58  ;;  %v4623_v44 = vpop.f32.mrb[5].mxu0 }
 0x212   : > { %v5709_v3 = vpack.c.bf16 %v4806_v1, %v4805_v25  ;;  %v6267_v51 = vadd.f32 %v4623_v44, %v1869_v50  ;;  %v6235_v28 = vpop.f32.mrb[6].mxu0 }
 0x213   : > { %5786 = vst [vmem:[%s8444_s24 + $0x8] sm:$0xff] %v5714_v61   ;;  %v4779_v45 = vadd.f32 %v6266_v22, %v8434_v2  ;;  %v6268_v27 = vadd.f32 %v6235_v28, %v6065_v54  ;;  %v4626_v53 = vpop.f32.mrb[7].mxu0 }
 0x214   : > { %5710 = vst [vmem:[%s8444_s24] sm:$0xff] %v5709_v3   ;;  %v4777_v21 = vadd.f32 %v6267_v51, %v8434_v2  ;;  %v6269_v47 = vadd.f32 %v4626_v53, %v1872_v18 }
 0x215   : > { %v4780_v46 = vadd.f32 %v6268_v27, %v8434_v2  ;;  %v4811_v60 = vmax.f32 %v4779_v45, 0.0 }
 0x216   : > { %v4778_v15 = vadd.f32 %v6269_v47, %v8434_v2  ;;  %v4809_v42 = vmax.f32 %v4777_v21, 0.0 }
 0x217   : > { %v4812_v20 = vmax.f32 %v4780_v46, 0.0 }
 0x218   : > { %v4810_v33 = vmax.f32 %v4778_v15, 0.0  ;;  %v6238_v12 = vpop.f32.mrb[8].mxu0 }
 0x219   : > { %v5724_v31 = vpack.c.bf16 %v4812_v20, %v4811_v60  ;;  %v6270_v57 = vadd.f32 %v6238_v12, %v6068_v11  ;;  %v4639_v8 = vpop.f32.mrb[9].mxu0 }
 0x21a   : > { %v5719_v48 = vpack.c.bf16 %v4810_v33, %v4809_v42  ;;  %v6271_v62 = vadd.f32 %v4639_v8, %v1885_v24  ;;  %v6239_v56 = vpop.f32.mrb[10].mxu0 }
 0x21b   : > { %5788 = vst [vmem:[%s8444_s24 + $0x18] sm:$0xff] %v5724_v31   ;;  %v4783_v40 = vadd.f32 %v6270_v57, %v8434_v2  ;;  %v6272_v13 = vadd.f32 %v6239_v56, %v6069_v32  ;;  %v4642_v17 = vpop.f32.mrb[11].mxu0 }
 0x21c   : > { %5787 = vst [vmem:[%s8444_s24 + $0x10] sm:$0xff] %v5719_v48   ;;  %v4781_v30 = vadd.f32 %v6271_v62, %v8434_v2  ;;  %v6273_v9 = vadd.f32 %v4642_v17, %v1888_v19 }
 0x21d   : > { %v4784_v14 = vadd.f32 %v6272_v13, %v8434_v2  ;;  %v4815_v4 = vmax.f32 %v4783_v40, 0.0 }
 0x21e   : > { %v4782_v63 = vadd.f32 %v6273_v9, %v8434_v2  ;;  %v4813_v16 = vmax.f32 %v4781_v30, 0.0 }
 0x21f   : > { %v4816_v43 = vmax.f32 %v4784_v14, 0.0 }
 0x220   : > { %v4814_v58 = vmax.f32 %v4782_v63, 0.0  ;;  %v6242_v50 = vpop.f32.mrb[12].mxu0 }
 0x221   : > { %v5734_v54 = vpack.c.bf16 %v4816_v43, %v4815_v4  ;;  %v6274_v18 = vadd.f32 %v6242_v50, %v8423_v41  ;;  %v4655_v11 = vpop.f32.mrb[13].mxu0 }
 0x222   : > { %v5729_v24 = vpack.c.bf16 %v4814_v58, %v4813_v16  ;;  %v6275_v32 = vadd.f32 %v4655_v11, %v8425_v5  ;;  %v6243_v52 = vpop.f32.mrb[14].mxu0 }
 0x223   : > { %5790 = vst [vmem:[%s8444_s24 + $0x28] sm:$0xff] %v5734_v54   ;;  %v4787_v19 = vadd.f32 %v6274_v18, %v8434_v2  ;;  %v6276_v39 = vadd.f32 %v6243_v52, %v8427_v55  ;;  %v4658_v0 = vpop.f32.mrb[15].mxu0 }
 0x224   : > { %5789 = vst [vmem:[%s8444_s24 + $0x20] sm:$0xff] %v5729_v24   ;;  %v4785_v36 = vadd.f32 %v6275_v32, %v8434_v2  ;;  %v6277_v10 = vadd.f32 %v4658_v0, %v8429_v29 }
 0x225   : > { %v4788_v59 = vadd.f32 %v6276_v39, %v8434_v2  ;;  %v4819_v38 = vmax.f32 %v4787_v19, 0.0 }
 0x226   : > { %v4786_v41 = vadd.f32 %v6277_v10, %v8434_v2  ;;  %v4817_v37 = vmax.f32 %v4785_v36, 0.0 }
 0x227   : > { %v4820_v5 = vmax.f32 %v4788_v59, 0.0 }
 0x228   : > { %v4818_v26 = vmax.f32 %v4786_v41, 0.0  ;;  %v6246_v35 = vpop.f32.mrb[16].mxu0 }
 0x229   : > { %v5744_v34 = vpack.c.bf16 %v4820_v5, %v4819_v38  ;;  %v6110_v6 = vpop.f32.mrb[16].mxu1  ;;  %v4671_v55 = vpop.f32.mrb[17].mxu0 }
 0x22a   : > { %v5739_v49 = vpack.c.bf16 %v4818_v26, %v4817_v37  ;;  %v6278_v23 = vadd.f32 %v6246_v35, %v6110_v6  ;;  %v2643_v25 = vpop.f32.mrb[17].mxu1  ;;  %v6247_v1 = vpop.f32.mrb[18].mxu0 }
 0x22b   : > { %5792 = vst [vmem:[%s8444_s24 + $0x38] sm:$0xff] %v5744_v34   ;;  %v6279_v7 = vadd.f32 %v4671_v55, %v2643_v25  ;;  %v6111_v29 = vpop.f32.mrb[18].mxu1  ;;  %v4674_v61 = vpop.f32.mrb[19].mxu0 }
 0x22c   : > { %5791 = vst [vmem:[%s8444_s24 + $0x30] sm:$0xff] %v5739_v49   ;;  %v4791_v22 = vadd.f32 %v6278_v23, %v8434_v2  ;;  %v6280_v44 = vadd.f32 %v6247_v1, %v6111_v29  ;;  %v2646_v3 = vpop.f32.mrb[19].mxu1 }
 0x22d   : > { %v4789_v51 = vadd.f32 %v6279_v7, %v8434_v2  ;;  %v6281_v28 = vadd.f32 %v4674_v61, %v2646_v3 }
 0x22e   : > { %v4792_v45 = vadd.f32 %v6280_v44, %v8434_v2  ;;  %v4823_v53 = vmax.f32 %v4791_v22, 0.0 }
 0x22f   : > { %v4790_v27 = vadd.f32 %v6281_v28, %v8434_v2  ;;  %v4821_v46 = vmax.f32 %v4789_v51, 0.0 }
 0x230   : > { %v4824_v21 = vmax.f32 %v4792_v45, 0.0  ;;  %v6250_v47 = vpop.f32.mrb[20].mxu0 }
 0x231   : > { %v4822_v15 = vmax.f32 %v4790_v27, 0.0  ;;  %v6114_v60 = vpop.f32.mrb[20].mxu1  ;;  %v4687_v20 = vpop.f32.mrb[21].mxu0 }
 0x232   : > { %v5754_v42 = vpack.c.bf16 %v4824_v21, %v4823_v53  ;;  %v6282_v33 = vadd.f32 %v6250_v47, %v6114_v60  ;;  %v2659_v12 = vpop.f32.mrb[21].mxu1  ;;  %v6251_v31 = vpop.f32.mrb[22].mxu0 }
 0x233   : > { %v5749_v57 = vpack.c.bf16 %v4822_v15, %v4821_v46  ;;  %v6283_v8 = vadd.f32 %v4687_v20, %v2659_v12  ;;  %v6115_v48 = vpop.f32.mrb[22].mxu1  ;;  %v4690_v62 = vpop.f32.mrb[23].mxu0 }
 0x234   : > { %5794 = vst [vmem:[%s8444_s24 + $0x48] sm:$0xff] %v5754_v42   ;;  %v4795_v56 = vadd.f32 %v6282_v33, %v8434_v2  ;;  %v6284_v40 = vadd.f32 %v6251_v31, %v6115_v48  ;;  %v2662_v13 = vpop.f32.mrb[23].mxu1 }
 0x235   : > { %5793 = vst [vmem:[%s8444_s24 + $0x40] sm:$0xff] %v5749_v57   ;;  %v4793_v17 = vadd.f32 %v6283_v8, %v8434_v2  ;;  %v6285_v30 = vadd.f32 %v4690_v62, %v2662_v13 }
 0x236   : > { %v4796_v9 = vadd.f32 %v6284_v40, %v8434_v2  ;;  %v4827_v63 = vmax.f32 %v4795_v56, 0.0 }
 0x237   : > { %v4794_v14 = vadd.f32 %v6285_v30, %v8434_v2  ;;  %v4825_v16 = vmax.f32 %v4793_v17, 0.0 }
 0x238   : > { %v4828_v4 = vmax.f32 %v4796_v9, 0.0  ;;  %v6254_v43 = vpop.f32.mrb[24].mxu0 }
 0x239   : > { %v4826_v58 = vmax.f32 %v4794_v14, 0.0  ;;  %v6118_v50 = vpop.f32.mrb[24].mxu1  ;;  %v4703_v54 = vpop.f32.mrb[25].mxu0 }
 0x23a   : > { %v5764_v18 = vpack.c.bf16 %v4828_v4, %v4827_v63  ;;  %v6286_v11 = vadd.f32 %v6254_v43, %v6118_v50  ;;  %v2675_v24 = vpop.f32.mrb[25].mxu1  ;;  %v6255_v32 = vpop.f32.mrb[26].mxu0 }
 0x23b   : > { %v5759_v52 = vpack.c.bf16 %v4826_v58, %v4825_v16  ;;  %v6287_v19 = vadd.f32 %v4703_v54, %v2675_v24  ;;  %v6119_v39 = vpop.f32.mrb[26].mxu1  ;;  %v4706_v0 = vpop.f32.mrb[27].mxu0 }
 0x23c   : > { %5796 = vst [vmem:[%s8444_s24 + $0x58] sm:$0xff] %v5764_v18   ;;  %v4799_v36 = vadd.f32 %v6286_v11, %v8434_v2  ;;  %v6288_v10 = vadd.f32 %v6255_v32, %v6119_v39  ;;  %v2678_v59 = vpop.f32.mrb[27].mxu1 }
 0x23d   : > { %5795 = vst [vmem:[%s8444_s24 + $0x50] sm:$0xff] %v5759_v52   ;;  %v4797_v41 = vadd.f32 %v6287_v19, %v8434_v2  ;;  %v6289_v38 = vadd.f32 %v4706_v0, %v2678_v59 }
 0x23e   : > { %v4800_v5 = vadd.f32 %v6288_v10, %v8434_v2  ;;  %v4831_v26 = vmax.f32 %v4799_v36, 0.0 }
 0x23f   : > { %v4798_v37 = vadd.f32 %v6289_v38, %v8434_v2  ;;  %v4829_v6 = vmax.f32 %v4797_v41, 0.0 }
 0x240   : > { %v4832_v35 = vmax.f32 %v4800_v5, 0.0  ;;  %v6258_v34 = vpop.f32.mrb[28].mxu0 }
 0x241   : > { %v4830_v55 = vmax.f32 %v4798_v37, 0.0  ;;  %v6122_v49 = vpop.f32.mrb[28].mxu1  ;;  %v4719_v23 = vpop.f32.mrb[29].mxu0 }
 0x242   : > { %v5774_v25 = vpack.c.bf16 %v4832_v35, %v4831_v26  ;;  %v6290_v1 = vadd.f32 %v6258_v34, %v6122_v49  ;;  %v2691_v7 = vpop.f32.mrb[29].mxu1  ;;  %v6259_v29 = vpop.f32.mrb[30].mxu0 }
 0x243   : > { %v5769_v61 = vpack.c.bf16 %v4830_v55, %v4829_v6  ;;  %v6291_v22 = vadd.f32 %v4719_v23, %v2691_v7  ;;  %v6123_v44 = vpop.f32.mrb[30].mxu1  ;;  %v4722_v3 = vpop.f32.mrb[31].mxu0 }
 0x244   : > { %5798 = vst [vmem:[%s8444_s24 + $0x68] sm:$0xff] %v5774_v25   ;;  %v4803_v51 = vadd.f32 %v6290_v1, %v8434_v2  ;;  %v6292_v28 = vadd.f32 %v6259_v29, %v6123_v44  ;;  %v2694_v45 = vpop.f32.mrb[31].mxu1 }
 0x245   : > { %5797 = vst [vmem:[%s8444_s24 + $0x60] sm:$0xff] %v5769_v61   ;;  %v4801_v27 = vadd.f32 %v6291_v22, %v8434_v2  ;;  %v6293_v53 = vadd.f32 %v4722_v3, %v2694_v45 }
 0x246   : > { %v4804_v21 = vadd.f32 %v6292_v28, %v8434_v2  ;;  %v4835_v46 = vmax.f32 %v4803_v51, 0.0 }
 0x247   : > { %v4802_v47 = vadd.f32 %v6293_v53, %v8434_v2  ;;  %v4833_v60 = vmax.f32 %v4801_v27, 0.0 }
 0x248   : > { %v4836_v15 = vmax.f32 %v4804_v21, 0.0 }
 0x249   : > { %v4834_v20 = vmax.f32 %v4802_v47, 0.0 }
 0x24a   : > { %v5784_v42 = vpack.c.bf16 %v4836_v15, %v4835_v46 }
 0x24b   : > { %v5779_v33 = vpack.c.bf16 %v4834_v20, %v4833_v60 }
 0x24c   : > { %5800 = vst [vmem:[%s8444_s24 + $0x78] sm:$0xff] %v5784_v42  }
 0x24d   : > { %5799 = vst [vmem:[%s8444_s24 + $0x70] sm:$0xff] %v5779_v33  }
 0x24e PF: > { %s13_s14 = sadd.s32 1, %s6680_s14   ;;  %s8574_s12 = smov %s6676_s13 }
 0x24f   : > { %p10_p5 = scmp.ge.s32.totalorder %s13_s14, 4   ;;  %s8575_s13 = smov %s8577_s15 }
 0x251   :  { %12 = sbr.rel (!%p10_p5) target bundleno = 2 (0x2), region = 73 }

</bundles_post_ra>
